<compile_context>
chip_gen: v7x
topology: tpu7x:2x2x1
jax: 0.10.0
libtpu: 0.0.40
codegen_flags: <defaults>
</compile_context>

<pallas_src>
import math

import jax
import jax.numpy as jnp
from jax.experimental import pallas as pl
from jax.experimental.pallas import tpu as pltpu

# ---------------- config (small synthetic ViT) ----------------
B = 2            # batch
C_IN = 3         # image channels
IMG = 16         # image height/width
PATCH = 8        # patch size (conv1 kernel == stride)
GRID = IMG // PATCH
N_PATCH = GRID * GRID          # 4
SEQ = N_PATCH + 1              # 5 real tokens (CLS + patches)
SEQ_PAD = 8                    # sublane-aligned sequence length
BT = B * SEQ_PAD               # 16 flattened (padded) tokens
WIDTH = 32                     # transformer width
HEADS = 4
HEAD_DIM = WIDTH // HEADS      # 8
MLP = 4 * WIDTH                # 128
LAYERS = 2
OUT_DIM = 16                   # CLIP image embed dim
OUT_PAD = 128                  # lane-dense padded output width
EPS = 1e-5
CPP = C_IN * PATCH * PATCH     # 192 flattened patch length
NEG = -1e9                     # additive mask for padded / cross-image keys

BF16 = jnp.bfloat16
F32 = jnp.float32

# 2-D "A @ B.T" dimension numbers: (M,K) x (N,K) -> (M,N)
_DN_NT = (((1,), (1,)), ((), ()))


def _ln(x, g, b):
    mu = jnp.mean(x, axis=-1, keepdims=True)
    var = jnp.mean(jnp.square(x - mu), axis=-1, keepdims=True)
    return (x - mu) * jax.lax.rsqrt(var + EPS) * g + b


# ---------------- single fused kernel ----------------
def _vit_kernel(patches_ref, w_patch_ref, tok_ref, lnpre_g_ref, lnpre_b_ref,
                mask_ref,
                ln1g_ref, ln1b_ref, wqkv_ref, bqkv_ref, wo_ref, bo_ref,
                ln2g_ref, ln2b_ref, wfc_ref, bfc_ref, wpr_ref, bpr_ref,
                lnpost_g_ref, lnpost_b_ref, proj_ref,
                out_ref, x_sc):
    # ---- patch embed + CLS/positional assembly: one matmul, one full store ----
    # patches rows for CLS / pad slots are zero, tok carries cls+pos / pos / 0.
    x0 = jnp.dot(patches_ref[...], w_patch_ref[...],
                 preferred_element_type=F32) + tok_ref[...]          # (BT, D)
    x_sc[...] = _ln(x0, lnpre_g_ref[...], lnpre_b_ref[...])          # ln_pre

    mask = mask_ref[...]                                             # (BT, BT)

    # ---- transformer residual blocks (weights stacked over layer dim) ----
    for l in range(LAYERS):
        # --- attention branch ---
        h = _ln(x_sc[...], ln1g_ref[l], ln1b_ref[l]).astype(BF16)    # (BT, D)
        qkv = jnp.dot(h, wqkv_ref[l],
                      preferred_element_type=F32) + bqkv_ref[l]      # (BT, 3D)
        qkv = qkv.astype(BF16)
        q = qkv[:, 0 * WIDTH:1 * WIDTH]   # 1/sqrt(head_dim) folded into Wq/bq
        k = qkv[:, 1 * WIDTH:2 * WIDTH]
        v = qkv[:, 2 * WIDTH:3 * WIDTH]

        pv_parts = []
        for hd in range(HEADS):
            sl = slice(hd * HEAD_DIM, (hd + 1) * HEAD_DIM)
            s = jax.lax.dot_general(q[:, sl], k[:, sl], _DN_NT,
                                    preferred_element_type=F32) + mask  # (BT,BT)
            m = jnp.max(s, axis=-1, keepdims=True)
            e = jnp.exp(s - m)
            p = e * pl.reciprocal(jnp.sum(e, axis=-1, keepdims=True),
                                  approx=True)
            pv_parts.append(jnp.dot(p.astype(BF16), v[:, sl],
                                    preferred_element_type=F32))        # (BT,DH)
        pv = jnp.concatenate(pv_parts, axis=-1).astype(BF16)            # (BT, D)
        attn = jnp.dot(pv, wo_ref[l],
                       preferred_element_type=F32) + bo_ref[l]          # (BT, D)
        x_sc[...] = x_sc[...] + attn                                    # residual

        # --- MLP branch ---
        x2 = x_sc[...]
        h2 = _ln(x2, ln2g_ref[l], ln2b_ref[l]).astype(BF16)
        f = jnp.dot(h2, wfc_ref[l],
                    preferred_element_type=F32) + bfc_ref[l]            # (BT, MLP)
        f = f * jax.nn.sigmoid(1.702 * f)                # QuickGELU (f32 VPU/EUP)
        f = jnp.dot(f.astype(BF16), wpr_ref[l],
                    preferred_element_type=F32) + bpr_ref[l]
        x_sc[...] = x2 + f

    # ---- ln_post on the B CLS rows + projection: one matmul, one store ----
    cls = jnp.concatenate(
        [x_sc[b * SEQ_PAD:b * SEQ_PAD + 1, :] for b in range(B)], axis=0)  # (B,D)
    hc = _ln(cls, lnpost_g_ref[...], lnpost_b_ref[...]).astype(BF16)
    out_ref[...] = jnp.dot(hc, proj_ref[...], preferred_element_type=F32)


# ---------------- parameter init (synthetic, torch-like layouts) ----------------
def init_params(key):
    def nrm(k, shape, scale=0.02):
        return scale * jax.random.normal(k, shape, F32)

    keys = iter(jax.random.split(key, 4 + LAYERS * 4))
    p = {
        "conv1_w": nrm(next(keys), (WIDTH, C_IN, PATCH, PATCH)),  # torch conv layout
        "class_emb": nrm(next(keys), (WIDTH,)),
        "pos_emb": nrm(next(keys), (SEQ, WIDTH)),
        "ln_pre_g": jnp.ones((1, WIDTH), F32), "ln_pre_b": jnp.zeros((1, WIDTH), F32),
        "ln_post_g": jnp.ones((1, WIDTH), F32), "ln_post_b": jnp.zeros((1, WIDTH), F32),
        "proj": nrm(next(keys), (WIDTH, OUT_DIM)),
        "blocks": [],
    }
    for _ in range(LAYERS):
        p["blocks"].append({
            "ln1_g": jnp.ones((1, WIDTH), F32), "ln1_b": jnp.zeros((1, WIDTH), F32),
            "wqkv": nrm(next(keys), (WIDTH, 3 * WIDTH)),
            "bqkv": jnp.zeros((1, 3 * WIDTH), F32),
            "wo": nrm(next(keys), (WIDTH, WIDTH)),
            "bo": jnp.zeros((1, WIDTH), F32),
            "ln2_g": jnp.ones((1, WIDTH), F32), "ln2_b": jnp.zeros((1, WIDTH), F32),
            "wfc": nrm(next(keys), (WIDTH, MLP)),
            "bfc": jnp.zeros((1, MLP), F32),
            "wproj": nrm(next(keys), (MLP, WIDTH)),
            "bproj": jnp.zeros((1, WIDTH), F32),
        })
    return p


# ---------- parameter prep: kernel-friendly layouts (plain-JAX glue) ----------
def prepare_kernel_params(p):
    scale = 1.0 / math.sqrt(HEAD_DIM)
    # conv1 weight as (C*P*P, WIDTH) matmul weight
    w_patch = p["conv1_w"].reshape(WIDTH, CPP).T.astype(BF16)

    # per-batch token table: [cls+pos0, pos1..pos4, 0, 0, 0], tiled over batch
    base = jnp.zeros((SEQ_PAD, WIDTH), F32).at[:SEQ].set(p["pos_emb"])
    base = base.at[0].add(p["class_emb"])
    tok_pad = jnp.tile(base, (B, 1))                                 # (BT, D)

    # block-diagonal additive attention mask: valid iff same image & real key
    idx = jnp.arange(BT)
    same_img = (idx[:, None] // SEQ_PAD) == (idx[None, :] // SEQ_PAD)
    real_key = (idx[None, :] % SEQ_PAD) < SEQ
    attn_bias = jnp.where(same_img & real_key, 0.0, NEG).astype(F32)  # (BT, BT)

    # fold 1/sqrt(head_dim) into the Q block of the fused QKV weight/bias
    qscale = jnp.concatenate([jnp.full((WIDTH,), scale, F32),
                              jnp.ones((2 * WIDTH,), F32)])

    names = ["ln1_g", "ln1_b", "wqkv", "bqkv", "wo", "bo",
             "ln2_g", "ln2_b", "wfc", "bfc", "wpr", "bpr"]
    stk = {k: [] for k in names}
    for blk in p["blocks"]:
        stk["ln1_g"].append(blk["ln1_g"]); stk["ln1_b"].append(blk["ln1_b"])
        stk["wqkv"].append((blk["wqkv"] * qscale[None, :]).astype(BF16))
        stk["bqkv"].append(blk["bqkv"] * qscale[None, :])
        stk["wo"].append(blk["wo"].astype(BF16)); stk["bo"].append(blk["bo"])
        stk["ln2_g"].append(blk["ln2_g"]); stk["ln2_b"].append(blk["ln2_b"])
        stk["wfc"].append(blk["wfc"].astype(BF16)); stk["bfc"].append(blk["bfc"])
        stk["wpr"].append(blk["wproj"].astype(BF16)); stk["bpr"].append(blk["bproj"])
    stacked = {k: jnp.stack(v, axis=0) for k, v in stk.items()}

    # lane-dense (128-wide) padded projection; sliced back to OUT_DIM in wrapper
    proj_pad = jnp.zeros((WIDTH, OUT_PAD), F32).at[:, :OUT_DIM].set(p["proj"])
    return dict(w_patch=w_patch, tok=tok_pad, attn_bias=attn_bias,
                ln_pre_g=p["ln_pre_g"], ln_pre_b=p["ln_pre_b"],
                ln_post_g=p["ln_post_g"], ln_post_b=p["ln_post_b"],
                proj=proj_pad.astype(BF16), **stacked)


# ---------------- forward (ImageEncoder.forward -> encode_image) ----------------
@jax.jit
def encode_image(images, kp):
    bb = images.shape[0]
    # patch extraction (pure layout glue; pixel order (c, ph, pw) matches conv1),
    # zero-padded so row 0 (CLS slot) and rows SEQ..SEQ_PAD-1 contribute nothing.
    x = images.reshape(bb, C_IN, GRID, PATCH, GRID, PATCH)
    x = x.transpose(0, 2, 4, 1, 3, 5).reshape(bb, N_PATCH, CPP)
    patches = jnp.zeros((bb, SEQ_PAD, CPP), F32).at[:, 1:1 + N_PATCH, :].set(x)
    patches = patches.reshape(bb * SEQ_PAD, CPP).astype(BF16)

    args = (patches, kp["w_patch"], kp["tok"], kp["ln_pre_g"], kp["ln_pre_b"],
            kp["attn_bias"],
            kp["ln1_g"], kp["ln1_b"], kp["wqkv"], kp["bqkv"], kp["wo"], kp["bo"],
            kp["ln2_g"], kp["ln2_b"], kp["wfc"], kp["bfc"], kp["wpr"], kp["bpr"],
            kp["ln_post_g"], kp["ln_post_b"], kp["proj"])

    out = pl.pallas_call(
        _vit_kernel,
        out_shape=jax.ShapeDtypeStruct((B, OUT_PAD), F32),
        in_specs=[pl.BlockSpec(memory_space=pltpu.MemorySpace.VMEM)] * len(args),
        out_specs=pl.BlockSpec(memory_space=pltpu.MemorySpace.VMEM),
        scratch_shapes=[pltpu.VMEM((BT, WIDTH), F32)],   # resident residual stream
    )(*args)
    return out[:, :OUT_DIM]


if __name__ == "__main__":
    key = jax.random.PRNGKey(0)
    k_img, k_par = jax.random.split(key)
    images = jax.random.normal(k_img, (B, C_IN, IMG, IMG), F32)
    params = init_params(k_par)
    kparams = prepare_kernel_params(params)

    out = encode_image(images, kparams)
    out = jax.block_until_ready(out)
    assert out.shape == (B, OUT_DIM), out.shape
    assert bool(jnp.all(jnp.isfinite(out)))
    print("KERNEL_OK")
</pallas_src>

<mosaic_0001>
module attributes {stable_mosaic.version = 11 : i64} {
  func.func @_vit_kernel(%arg0: memref<16x192xbf16, #tpu.memory_space<vmem>>, %arg1: memref<192x32xbf16, #tpu.memory_space<vmem>>, %arg2: memref<16x32xf32, #tpu.memory_space<vmem>>, %arg3: memref<1x32xf32, #tpu.memory_space<vmem>>, %arg4: memref<1x32xf32, #tpu.memory_space<vmem>>, %arg5: memref<16x16xf32, #tpu.memory_space<vmem>>, %arg6: memref<2x1x32xf32, #tpu.memory_space<vmem>>, %arg7: memref<2x1x32xf32, #tpu.memory_space<vmem>>, %arg8: memref<2x32x96xbf16, #tpu.memory_space<vmem>>, %arg9: memref<2x1x96xf32, #tpu.memory_space<vmem>>, %arg10: memref<2x32x32xbf16, #tpu.memory_space<vmem>>, %arg11: memref<2x1x32xf32, #tpu.memory_space<vmem>>, %arg12: memref<2x1x32xf32, #tpu.memory_space<vmem>>, %arg13: memref<2x1x32xf32, #tpu.memory_space<vmem>>, %arg14: memref<2x32x128xbf16, #tpu.memory_space<vmem>>, %arg15: memref<2x1x128xf32, #tpu.memory_space<vmem>>, %arg16: memref<2x128x32xbf16, #tpu.memory_space<vmem>>, %arg17: memref<2x1x32xf32, #tpu.memory_space<vmem>>, %arg18: memref<1x32xf32, #tpu.memory_space<vmem>>, %arg19: memref<1x32xf32, #tpu.memory_space<vmem>>, %arg20: memref<32x128xbf16, #tpu.memory_space<vmem>>, %arg21: memref<2x128xf32, #tpu.memory_space<vmem>>, %arg22: memref<16x32xf32, #tpu.memory_space<vmem>>) attributes {dimension_semantics = [], scalar_prefetch = 0 : i64, scratch_operands = 1 : i64, tpu.core_type = #tpu.core_type<tc>} {
    %c0 = arith.constant 0 : index
    %c0_0 = arith.constant 0 : index
    %0 = vector.load %arg0[%c0, %c0_0] : memref<16x192xbf16, #tpu.memory_space<vmem>>, vector<16x192xbf16>
    %c0_1 = arith.constant 0 : index
    %c0_2 = arith.constant 0 : index
    %1 = vector.load %arg1[%c0_1, %c0_2] : memref<192x32xbf16, #tpu.memory_space<vmem>>, vector<192x32xbf16>
    %cst = arith.constant dense<0.000000e+00> : vector<16x32xf32>
    %2 = tpu.matmul %0, %1, %cst {dimension_numbers = #tpu.dot_dimension_numbers<[1], [0], [0], [1], [0, 0, 1, 1], [], []>} : vector<16x192xbf16>, vector<192x32xbf16>, vector<16x32xf32> -> vector<16x32xf32>
    %c0_3 = arith.constant 0 : index
    %c0_4 = arith.constant 0 : index
    %3 = vector.load %arg2[%c0_3, %c0_4] : memref<16x32xf32, #tpu.memory_space<vmem>>, vector<16x32xf32>
    %4 = arith.addf %2, %3 : vector<16x32xf32>
    %c0_5 = arith.constant 0 : index
    %c0_6 = arith.constant 0 : index
    %5 = vector.load %arg3[%c0_5, %c0_6] : memref<1x32xf32, #tpu.memory_space<vmem>>, vector<1x32xf32>
    %c0_7 = arith.constant 0 : index
    %c0_8 = arith.constant 0 : index
    %6 = vector.load %arg4[%c0_7, %c0_8] : memref<1x32xf32, #tpu.memory_space<vmem>>, vector<1x32xf32>
    %cst_9 = arith.constant dense<0.000000e+00> : vector<16xf32>
    %7 = vector.multi_reduction <add>, %4, %cst_9 [1] : vector<16x32xf32> to vector<16xf32>
    %8 = vector.shape_cast %7 : vector<16xf32> to vector<16x1xf32>
    %cst_10 = arith.constant 3.200000e+01 : f32
    %9 = vector.broadcast %cst_10 : f32 to vector<16x1xf32>
    %10 = arith.divf %8, %9 : vector<16x1xf32>
    %11 = vector.broadcast %10 : vector<16x1xf32> to vector<16x32xf32>
    %12 = arith.subf %4, %11 : vector<16x32xf32>
    %13 = arith.mulf %12, %12 : vector<16x32xf32>
    %cst_11 = arith.constant dense<0.000000e+00> : vector<16xf32>
    %14 = vector.multi_reduction <add>, %13, %cst_11 [1] : vector<16x32xf32> to vector<16xf32>
    %15 = vector.shape_cast %14 : vector<16xf32> to vector<16x1xf32>
    %cst_12 = arith.constant 3.200000e+01 : f32
    %16 = vector.broadcast %cst_12 : f32 to vector<16x1xf32>
    %17 = arith.divf %15, %16 : vector<16x1xf32>
    %18 = vector.broadcast %10 : vector<16x1xf32> to vector<16x32xf32>
    %19 = arith.subf %4, %18 : vector<16x32xf32>
    %cst_13 = arith.constant 9.99999974E-6 : f32
    %20 = vector.broadcast %cst_13 : f32 to vector<16x1xf32>
    %21 = arith.addf %17, %20 : vector<16x1xf32>
    %22 = math.rsqrt %21 : vector<16x1xf32>
    %23 = vector.broadcast %22 : vector<16x1xf32> to vector<16x32xf32>
    %24 = arith.mulf %19, %23 : vector<16x32xf32>
    %25 = vector.broadcast %5 : vector<1x32xf32> to vector<16x32xf32>
    %26 = arith.mulf %24, %25 : vector<16x32xf32>
    %27 = vector.broadcast %6 : vector<1x32xf32> to vector<16x32xf32>
    %28 = arith.addf %26, %27 : vector<16x32xf32>
    %c0_14 = arith.constant 0 : index
    %c0_15 = arith.constant 0 : index
    %29 = vector.load %arg22[%c0_14, %c0_15] : memref<16x32xf32, #tpu.memory_space<vmem>>, vector<16x32xf32>
    tpu.vector_store %arg22[%c0_14, %c0_15], %28 {strides = array<i32>} : memref<16x32xf32, #tpu.memory_space<vmem>>, vector<16x32xf32>,
    %c0_16 = arith.constant 0 : index
    %c0_17 = arith.constant 0 : index
    %30 = vector.load %arg5[%c0_16, %c0_17] : memref<16x16xf32, #tpu.memory_space<vmem>>, vector<16x16xf32>
    %c0_18 = arith.constant 0 : index
    %c0_19 = arith.constant 0 : index
    %31 = vector.load %arg22[%c0_18, %c0_19] : memref<16x32xf32, #tpu.memory_space<vmem>>, vector<16x32xf32>
    %c0_20 = arith.constant 0 : index
    %c0_21 = arith.constant 0 : index
    %c0_22 = arith.constant 0 : index
    %32 = vector.load %arg6[%c0_20, %c0_21, %c0_22] : memref<2x1x32xf32, #tpu.memory_space<vmem>>, vector<1x1x32xf32>
    %33 = vector.shape_cast %32 : vector<1x1x32xf32> to vector<1x32xf32>
    %c0_23 = arith.constant 0 : index
    %c0_24 = arith.constant 0 : index
    %c0_25 = arith.constant 0 : index
    %34 = vector.load %arg7[%c0_23, %c0_24, %c0_25] : memref<2x1x32xf32, #tpu.memory_space<vmem>>, vector<1x1x32xf32>
    %35 = vector.shape_cast %34 : vector<1x1x32xf32> to vector<1x32xf32>
    %cst_26 = arith.constant dense<0.000000e+00> : vector<16xf32>
    %36 = vector.multi_reduction <add>, %31, %cst_26 [1] : vector<16x32xf32> to vector<16xf32>
    %37 = vector.shape_cast %36 : vector<16xf32> to vector<16x1xf32>
    %cst_27 = arith.constant 3.200000e+01 : f32
    %38 = vector.broadcast %cst_27 : f32 to vector<16x1xf32>
    %39 = arith.divf %37, %38 : vector<16x1xf32>
    %40 = vector.broadcast %39 : vector<16x1xf32> to vector<16x32xf32>
    %41 = arith.subf %31, %40 : vector<16x32xf32>
    %42 = arith.mulf %41, %41 : vector<16x32xf32>
    %cst_28 = arith.constant dense<0.000000e+00> : vector<16xf32>
    %43 = vector.multi_reduction <add>, %42, %cst_28 [1] : vector<16x32xf32> to vector<16xf32>
    %44 = vector.shape_cast %43 : vector<16xf32> to vector<16x1xf32>
    %cst_29 = arith.constant 3.200000e+01 : f32
    %45 = vector.broadcast %cst_29 : f32 to vector<16x1xf32>
    %46 = arith.divf %44, %45 : vector<16x1xf32>
    %47 = vector.broadcast %39 : vector<16x1xf32> to vector<16x32xf32>
    %48 = arith.subf %31, %47 : vector<16x32xf32>
    %cst_30 = arith.constant 9.99999974E-6 : f32
    %49 = vector.broadcast %cst_30 : f32 to vector<16x1xf32>
    %50 = arith.addf %46, %49 : vector<16x1xf32>
    %51 = math.rsqrt %50 : vector<16x1xf32>
    %52 = vector.broadcast %51 : vector<16x1xf32> to vector<16x32xf32>
    %53 = arith.mulf %48, %52 : vector<16x32xf32>
    %54 = vector.broadcast %33 : vector<1x32xf32> to vector<16x32xf32>
    %55 = arith.mulf %53, %54 : vector<16x32xf32>
    %56 = vector.broadcast %35 : vector<1x32xf32> to vector<16x32xf32>
    %57 = arith.addf %55, %56 : vector<16x32xf32>
    %58 = arith.truncf %57 : vector<16x32xf32> to vector<16x32xbf16>
    %c0_31 = arith.constant 0 : index
    %c0_32 = arith.constant 0 : index
    %c0_33 = arith.constant 0 : index
    %59 = vector.load %arg8[%c0_31, %c0_32, %c0_33] : memref<2x32x96xbf16, #tpu.memory_space<vmem>>, vector<1x32x96xbf16>
    %60 = vector.shape_cast %59 : vector<1x32x96xbf16> to vector<32x96xbf16>
    %cst_34 = arith.constant dense<0.000000e+00> : vector<16x96xf32>
    %61 = tpu.matmul %58, %60, %cst_34 {dimension_numbers = #tpu.dot_dimension_numbers<[1], [0], [0], [1], [0, 0, 1, 1], [], []>} : vector<16x32xbf16>, vector<32x96xbf16>, vector<16x96xf32> -> vector<16x96xf32>
    %c0_35 = arith.constant 0 : index
    %c0_36 = arith.constant 0 : index
    %c0_37 = arith.constant 0 : index
    %62 = vector.load %arg9[%c0_35, %c0_36, %c0_37] : memref<2x1x96xf32, #tpu.memory_space<vmem>>, vector<1x1x96xf32>
    %63 = vector.shape_cast %62 : vector<1x1x96xf32> to vector<1x96xf32>
    %64 = vector.broadcast %63 : vector<1x96xf32> to vector<16x96xf32>
    %65 = arith.addf %61, %64 : vector<16x96xf32>
    %66 = arith.truncf %65 : vector<16x96xf32> to vector<16x96xbf16>
    %67 = vector.extract_strided_slice %66 {offsets = [0, 0], sizes = [16, 32], strides = [1, 1]} : vector<16x96xbf16> to vector<16x32xbf16>
    %68 = vector.extract_strided_slice %66 {offsets = [0, 32], sizes = [16, 32], strides = [1, 1]} : vector<16x96xbf16> to vector<16x32xbf16>
    %69 = vector.extract_strided_slice %66 {offsets = [0, 64], sizes = [16, 32], strides = [1, 1]} : vector<16x96xbf16> to vector<16x32xbf16>
    %70 = vector.extract_strided_slice %67 {offsets = [0, 0], sizes = [16, 8], strides = [1, 1]} : vector<16x32xbf16> to vector<16x8xbf16>
    %71 = vector.extract_strided_slice %68 {offsets = [0, 0], sizes = [16, 8], strides = [1, 1]} : vector<16x32xbf16> to vector<16x8xbf16>
    %cst_38 = arith.constant dense<0.000000e+00> : vector<16x16xf32>
    %72 = tpu.matmul %70, %71, %cst_38 {dimension_numbers = #tpu.dot_dimension_numbers<[1], [1], [0], [0], [0, 0, 1, 0], [], []>} : vector<16x8xbf16>, vector<16x8xbf16>, vector<16x16xf32> -> vector<16x16xf32>
    %73 = arith.addf %72, %30 : vector<16x16xf32>
    %cst_39 = arith.constant dense<0xFF800000> : vector<16xf32>
    %74 = vector.multi_reduction <maximumf>, %73, %cst_39 [1] : vector<16x16xf32> to vector<16xf32>
    %75 = vector.shape_cast %74 : vector<16xf32> to vector<16x1xf32>
    %76 = vector.broadcast %75 : vector<16x1xf32> to vector<16x16xf32>
    %77 = arith.subf %73, %76 : vector<16x16xf32>
    %78 = math.exp %77 : vector<16x16xf32>
    %cst_40 = arith.constant dense<0.000000e+00> : vector<16xf32>
    %79 = vector.multi_reduction <add>, %78, %cst_40 [1] : vector<16x16xf32> to vector<16xf32>
    %80 = vector.shape_cast %79 : vector<16xf32> to vector<16x1xf32>
    %81 = tpu.reciprocal %80 {approx = true} : vector<16x1xf32> -> vector<16x1xf32>
    %82 = vector.broadcast %81 : vector<16x1xf32> to vector<16x16xf32>
    %83 = arith.mulf %78, %82 : vector<16x16xf32>
    %84 = arith.truncf %83 : vector<16x16xf32> to vector<16x16xbf16>
    %85 = vector.extract_strided_slice %69 {offsets = [0, 0], sizes = [16, 8], strides = [1, 1]} : vector<16x32xbf16> to vector<16x8xbf16>
    %cst_41 = arith.constant dense<0.000000e+00> : vector<16x8xf32>
    %86 = tpu.matmul %84, %85, %cst_41 {dimension_numbers = #tpu.dot_dimension_numbers<[1], [0], [0], [1], [0, 0, 1, 1], [], []>} : vector<16x16xbf16>, vector<16x8xbf16>, vector<16x8xf32> -> vector<16x8xf32>
    %87 = vector.extract_strided_slice %67 {offsets = [0, 8], sizes = [16, 8], strides = [1, 1]} : vector<16x32xbf16> to vector<16x8xbf16>
    %88 = vector.extract_strided_slice %68 {offsets = [0, 8], sizes = [16, 8], strides = [1, 1]} : vector<16x32xbf16> to vector<16x8xbf16>
    %cst_42 = arith.constant dense<0.000000e+00> : vector<16x16xf32>
    %89 = tpu.matmul %87, %88, %cst_42 {dimension_numbers = #tpu.dot_dimension_numbers<[1], [1], [0], [0], [0, 0, 1, 0], [], []>} : vector<16x8xbf16>, vector<16x8xbf16>, vector<16x16xf32> -> vector<16x16xf32>
    %90 = arith.addf %89, %30 : vector<16x16xf32>
    %cst_43 = arith.constant dense<0xFF800000> : vector<16xf32>
    %91 = vector.multi_reduction <maximumf>, %90, %cst_43 [1] : vector<16x16xf32> to vector<16xf32>
    %92 = vector.shape_cast %91 : vector<16xf32> to vector<16x1xf32>
    %93 = vector.broadcast %92 : vector<16x1xf32> to vector<16x16xf32>
    %94 = arith.subf %90, %93 : vector<16x16xf32>
    %95 = math.exp %94 : vector<16x16xf32>
    %cst_44 = arith.constant dense<0.000000e+00> : vector<16xf32>
    %96 = vector.multi_reduction <add>, %95, %cst_44 [1] : vector<16x16xf32> to vector<16xf32>
    %97 = vector.shape_cast %96 : vector<16xf32> to vector<16x1xf32>
    %98 = tpu.reciprocal %97 {approx = true} : vector<16x1xf32> -> vector<16x1xf32>
    %99 = vector.broadcast %98 : vector<16x1xf32> to vector<16x16xf32>
    %100 = arith.mulf %95, %99 : vector<16x16xf32>
    %101 = arith.truncf %100 : vector<16x16xf32> to vector<16x16xbf16>
    %102 = vector.extract_strided_slice %69 {offsets = [0, 8], sizes = [16, 8], strides = [1, 1]} : vector<16x32xbf16> to vector<16x8xbf16>
    %cst_45 = arith.constant dense<0.000000e+00> : vector<16x8xf32>
    %103 = tpu.matmul %101, %102, %cst_45 {dimension_numbers = #tpu.dot_dimension_numbers<[1], [0], [0], [1], [0, 0, 1, 1], [], []>} : vector<16x16xbf16>, vector<16x8xbf16>, vector<16x8xf32> -> vector<16x8xf32>
    %104 = vector.extract_strided_slice %67 {offsets = [0, 16], sizes = [16, 8], strides = [1, 1]} : vector<16x32xbf16> to vector<16x8xbf16>
    %105 = vector.extract_strided_slice %68 {offsets = [0, 16], sizes = [16, 8], strides = [1, 1]} : vector<16x32xbf16> to vector<16x8xbf16>
    %cst_46 = arith.constant dense<0.000000e+00> : vector<16x16xf32>
    %106 = tpu.matmul %104, %105, %cst_46 {dimension_numbers = #tpu.dot_dimension_numbers<[1], [1], [0], [0], [0, 0, 1, 0], [], []>} : vector<16x8xbf16>, vector<16x8xbf16>, vector<16x16xf32> -> vector<16x16xf32>
    %107 = arith.addf %106, %30 : vector<16x16xf32>
    %cst_47 = arith.constant dense<0xFF800000> : vector<16xf32>
    %108 = vector.multi_reduction <maximumf>, %107, %cst_47 [1] : vector<16x16xf32> to vector<16xf32>
    %109 = vector.shape_cast %108 : vector<16xf32> to vector<16x1xf32>
    %110 = vector.broadcast %109 : vector<16x1xf32> to vector<16x16xf32>
    %111 = arith.subf %107, %110 : vector<16x16xf32>
    %112 = math.exp %111 : vector<16x16xf32>
    %cst_48 = arith.constant dense<0.000000e+00> : vector<16xf32>
    %113 = vector.multi_reduction <add>, %112, %cst_48 [1] : vector<16x16xf32> to vector<16xf32>
    %114 = vector.shape_cast %113 : vector<16xf32> to vector<16x1xf32>
    %115 = tpu.reciprocal %114 {approx = true} : vector<16x1xf32> -> vector<16x1xf32>
    %116 = vector.broadcast %115 : vector<16x1xf32> to vector<16x16xf32>
    %117 = arith.mulf %112, %116 : vector<16x16xf32>
    %118 = arith.truncf %117 : vector<16x16xf32> to vector<16x16xbf16>
    %119 = vector.extract_strided_slice %69 {offsets = [0, 16], sizes = [16, 8], strides = [1, 1]} : vector<16x32xbf16> to vector<16x8xbf16>
    %cst_49 = arith.constant dense<0.000000e+00> : vector<16x8xf32>
    %120 = tpu.matmul %118, %119, %cst_49 {dimension_numbers = #tpu.dot_dimension_numbers<[1], [0], [0], [1], [0, 0, 1, 1], [], []>} : vector<16x16xbf16>, vector<16x8xbf16>, vector<16x8xf32> -> vector<16x8xf32>
    %121 = vector.extract_strided_slice %67 {offsets = [0, 24], sizes = [16, 8], strides = [1, 1]} : vector<16x32xbf16> to vector<16x8xbf16>
    %122 = vector.extract_strided_slice %68 {offsets = [0, 24], sizes = [16, 8], strides = [1, 1]} : vector<16x32xbf16> to vector<16x8xbf16>
    %cst_50 = arith.constant dense<0.000000e+00> : vector<16x16xf32>
    %123 = tpu.matmul %121, %122, %cst_50 {dimension_numbers = #tpu.dot_dimension_numbers<[1], [1], [0], [0], [0, 0, 1, 0], [], []>} : vector<16x8xbf16>, vector<16x8xbf16>, vector<16x16xf32> -> vector<16x16xf32>
    %124 = arith.addf %123, %30 : vector<16x16xf32>
    %cst_51 = arith.constant dense<0xFF800000> : vector<16xf32>
    %125 = vector.multi_reduction <maximumf>, %124, %cst_51 [1] : vector<16x16xf32> to vector<16xf32>
    %126 = vector.shape_cast %125 : vector<16xf32> to vector<16x1xf32>
    %127 = vector.broadcast %126 : vector<16x1xf32> to vector<16x16xf32>
    %128 = arith.subf %124, %127 : vector<16x16xf32>
    %129 = math.exp %128 : vector<16x16xf32>
    %cst_52 = arith.constant dense<0.000000e+00> : vector<16xf32>
    %130 = vector.multi_reduction <add>, %129, %cst_52 [1] : vector<16x16xf32> to vector<16xf32>
    %131 = vector.shape_cast %130 : vector<16xf32> to vector<16x1xf32>
    %132 = tpu.reciprocal %131 {approx = true} : vector<16x1xf32> -> vector<16x1xf32>
    %133 = vector.broadcast %132 : vector<16x1xf32> to vector<16x16xf32>
    %134 = arith.mulf %129, %133 : vector<16x16xf32>
    %135 = arith.truncf %134 : vector<16x16xf32> to vector<16x16xbf16>
    %136 = vector.extract_strided_slice %69 {offsets = [0, 24], sizes = [16, 8], strides = [1, 1]} : vector<16x32xbf16> to vector<16x8xbf16>
    %cst_53 = arith.constant dense<0.000000e+00> : vector<16x8xf32>
    %137 = tpu.matmul %135, %136, %cst_53 {dimension_numbers = #tpu.dot_dimension_numbers<[1], [0], [0], [1], [0, 0, 1, 1], [], []>} : vector<16x16xbf16>, vector<16x8xbf16>, vector<16x8xf32> -> vector<16x8xf32>
    %138 = tpu.concatenate %86, %103, %120, %137 in 1 : vector<16x8xf32>, vector<16x8xf32>, vector<16x8xf32>, vector<16x8xf32> -> vector<16x32xf32>
    %139 = arith.truncf %138 : vector<16x32xf32> to vector<16x32xbf16>
    %c0_54 = arith.constant 0 : index
    %c0_55 = arith.constant 0 : index
    %c0_56 = arith.constant 0 : index
    %140 = vector.load %arg10[%c0_54, %c0_55, %c0_56] : memref<2x32x32xbf16, #tpu.memory_space<vmem>>, vector<1x32x32xbf16>
    %141 = vector.shape_cast %140 : vector<1x32x32xbf16> to vector<32x32xbf16>
    %cst_57 = arith.constant dense<0.000000e+00> : vector<16x32xf32>
    %142 = tpu.matmul %139, %141, %cst_57 {dimension_numbers = #tpu.dot_dimension_numbers<[1], [0], [0], [1], [0, 0, 1, 1], [], []>} : vector<16x32xbf16>, vector<32x32xbf16>, vector<16x32xf32> -> vector<16x32xf32>
    %c0_58 = arith.constant 0 : index
    %c0_59 = arith.constant 0 : index
    %c0_60 = arith.constant 0 : index
    %143 = vector.load %arg11[%c0_58, %c0_59, %c0_60] : memref<2x1x32xf32, #tpu.memory_space<vmem>>, vector<1x1x32xf32>
    %144 = vector.shape_cast %143 : vector<1x1x32xf32> to vector<1x32xf32>
    %145 = vector.broadcast %144 : vector<1x32xf32> to vector<16x32xf32>
    %146 = arith.addf %142, %145 : vector<16x32xf32>
    %c0_61 = arith.constant 0 : index
    %c0_62 = arith.constant 0 : index
    %147 = vector.load %arg22[%c0_61, %c0_62] : memref<16x32xf32, #tpu.memory_space<vmem>>, vector<16x32xf32>
    %148 = arith.addf %147, %146 : vector<16x32xf32>
    %c0_63 = arith.constant 0 : index
    %c0_64 = arith.constant 0 : index
    %149 = vector.load %arg22[%c0_63, %c0_64] : memref<16x32xf32, #tpu.memory_space<vmem>>, vector<16x32xf32>
    tpu.vector_store %arg22[%c0_63, %c0_64], %148 {strides = array<i32>} : memref<16x32xf32, #tpu.memory_space<vmem>>, vector<16x32xf32>,
    %c0_65 = arith.constant 0 : index
    %c0_66 = arith.constant 0 : index
    %150 = vector.load %arg22[%c0_65, %c0_66] : memref<16x32xf32, #tpu.memory_space<vmem>>, vector<16x32xf32>
    %c0_67 = arith.constant 0 : index
    %c0_68 = arith.constant 0 : index
    %c0_69 = arith.constant 0 : index
    %151 = vector.load %arg12[%c0_67, %c0_68, %c0_69] : memref<2x1x32xf32, #tpu.memory_space<vmem>>, vector<1x1x32xf32>
    %152 = vector.shape_cast %151 : vector<1x1x32xf32> to vector<1x32xf32>
    %c0_70 = arith.constant 0 : index
    %c0_71 = arith.constant 0 : index
    %c0_72 = arith.constant 0 : index
    %153 = vector.load %arg13[%c0_70, %c0_71, %c0_72] : memref<2x1x32xf32, #tpu.memory_space<vmem>>, vector<1x1x32xf32>
    %154 = vector.shape_cast %153 : vector<1x1x32xf32> to vector<1x32xf32>
    %cst_73 = arith.constant dense<0.000000e+00> : vector<16xf32>
    %155 = vector.multi_reduction <add>, %150, %cst_73 [1] : vector<16x32xf32> to vector<16xf32>
    %156 = vector.shape_cast %155 : vector<16xf32> to vector<16x1xf32>
    %cst_74 = arith.constant 3.200000e+01 : f32
    %157 = vector.broadcast %cst_74 : f32 to vector<16x1xf32>
    %158 = arith.divf %156, %157 : vector<16x1xf32>
    %159 = vector.broadcast %158 : vector<16x1xf32> to vector<16x32xf32>
    %160 = arith.subf %150, %159 : vector<16x32xf32>
    %161 = arith.mulf %160, %160 : vector<16x32xf32>
    %cst_75 = arith.constant dense<0.000000e+00> : vector<16xf32>
    %162 = vector.multi_reduction <add>, %161, %cst_75 [1] : vector<16x32xf32> to vector<16xf32>
    %163 = vector.shape_cast %162 : vector<16xf32> to vector<16x1xf32>
    %cst_76 = arith.constant 3.200000e+01 : f32
    %164 = vector.broadcast %cst_76 : f32 to vector<16x1xf32>
    %165 = arith.divf %163, %164 : vector<16x1xf32>
    %166 = vector.broadcast %158 : vector<16x1xf32> to vector<16x32xf32>
    %167 = arith.subf %150, %166 : vector<16x32xf32>
    %cst_77 = arith.constant 9.99999974E-6 : f32
    %168 = vector.broadcast %cst_77 : f32 to vector<16x1xf32>
    %169 = arith.addf %165, %168 : vector<16x1xf32>
    %170 = math.rsqrt %169 : vector<16x1xf32>
    %171 = vector.broadcast %170 : vector<16x1xf32> to vector<16x32xf32>
    %172 = arith.mulf %167, %171 : vector<16x32xf32>
    %173 = vector.broadcast %152 : vector<1x32xf32> to vector<16x32xf32>
    %174 = arith.mulf %172, %173 : vector<16x32xf32>
    %175 = vector.broadcast %154 : vector<1x32xf32> to vector<16x32xf32>
    %176 = arith.addf %174, %175 : vector<16x32xf32>
    %177 = arith.truncf %176 : vector<16x32xf32> to vector<16x32xbf16>
    %c0_78 = arith.constant 0 : index
    %c0_79 = arith.constant 0 : index
    %c0_80 = arith.constant 0 : index
    %178 = vector.load %arg14[%c0_78, %c0_79, %c0_80] : memref<2x32x128xbf16, #tpu.memory_space<vmem>>, vector<1x32x128xbf16>
    %179 = vector.shape_cast %178 : vector<1x32x128xbf16> to vector<32x128xbf16>
    %cst_81 = arith.constant dense<0.000000e+00> : vector<16x128xf32>
    %180 = tpu.matmul %177, %179, %cst_81 {dimension_numbers = #tpu.dot_dimension_numbers<[1], [0], [0], [1], [0, 0, 1, 1], [], []>} : vector<16x32xbf16>, vector<32x128xbf16>, vector<16x128xf32> -> vector<16x128xf32>
    %c0_82 = arith.constant 0 : index
    %c0_83 = arith.constant 0 : index
    %c0_84 = arith.constant 0 : index
    %181 = vector.load %arg15[%c0_82, %c0_83, %c0_84] : memref<2x1x128xf32, #tpu.memory_space<vmem>>, vector<1x1x128xf32>
    %182 = vector.shape_cast %181 : vector<1x1x128xf32> to vector<1x128xf32>
    %183 = vector.broadcast %182 : vector<1x128xf32> to vector<16x128xf32>
    %184 = arith.addf %180, %183 : vector<16x128xf32>
    %cst_85 = arith.constant 1.702000e+00 : f32
    %185 = vector.broadcast %cst_85 : f32 to vector<16x128xf32>
    %186 = arith.mulf %185, %184 : vector<16x128xf32>
    %187 = arith.negf %186 : vector<16x128xf32>
    %188 = math.exp %187 : vector<16x128xf32>
    %cst_86 = arith.constant 1.000000e+00 : f32
    %189 = vector.broadcast %cst_86 : f32 to vector<16x128xf32>
    %190 = arith.addf %189, %188 : vector<16x128xf32>
    %191 = arith.divf %189, %190 : vector<16x128xf32>
    %192 = arith.mulf %184, %191 : vector<16x128xf32>
    %193 = arith.truncf %192 : vector<16x128xf32> to vector<16x128xbf16>
    %c0_87 = arith.constant 0 : index
    %c0_88 = arith.constant 0 : index
    %c0_89 = arith.constant 0 : index
    %194 = vector.load %arg16[%c0_87, %c0_88, %c0_89] : memref<2x128x32xbf16, #tpu.memory_space<vmem>>, vector<1x128x32xbf16>
    %195 = vector.shape_cast %194 : vector<1x128x32xbf16> to vector<128x32xbf16>
    %cst_90 = arith.constant dense<0.000000e+00> : vector<16x32xf32>
    %196 = tpu.matmul %193, %195, %cst_90 {dimension_numbers = #tpu.dot_dimension_numbers<[1], [0], [0], [1], [0, 0, 1, 1], [], []>} : vector<16x128xbf16>, vector<128x32xbf16>, vector<16x32xf32> -> vector<16x32xf32>
    %c0_91 = arith.constant 0 : index
    %c0_92 = arith.constant 0 : index
    %c0_93 = arith.constant 0 : index
    %197 = vector.load %arg17[%c0_91, %c0_92, %c0_93] : memref<2x1x32xf32, #tpu.memory_space<vmem>>, vector<1x1x32xf32>
    %198 = vector.shape_cast %197 : vector<1x1x32xf32> to vector<1x32xf32>
    %199 = vector.broadcast %198 : vector<1x32xf32> to vector<16x32xf32>
    %200 = arith.addf %196, %199 : vector<16x32xf32>
    %201 = arith.addf %150, %200 : vector<16x32xf32>
    %c0_94 = arith.constant 0 : index
    %c0_95 = arith.constant 0 : index
    %202 = vector.load %arg22[%c0_94, %c0_95] : memref<16x32xf32, #tpu.memory_space<vmem>>, vector<16x32xf32>
    tpu.vector_store %arg22[%c0_94, %c0_95], %201 {strides = array<i32>} : memref<16x32xf32, #tpu.memory_space<vmem>>, vector<16x32xf32>,
    %c0_96 = arith.constant 0 : index
    %c0_97 = arith.constant 0 : index
    %203 = vector.load %arg22[%c0_96, %c0_97] : memref<16x32xf32, #tpu.memory_space<vmem>>, vector<16x32xf32>
    %c1 = arith.constant 1 : index
    %c0_98 = arith.constant 0 : index
    %c0_99 = arith.constant 0 : index
    %204 = vector.load %arg6[%c1, %c0_98, %c0_99] : memref<2x1x32xf32, #tpu.memory_space<vmem>>, vector<1x1x32xf32>
    %205 = vector.shape_cast %204 : vector<1x1x32xf32> to vector<1x32xf32>
    %c1_100 = arith.constant 1 : index
    %c0_101 = arith.constant 0 : index
    %c0_102 = arith.constant 0 : index
    %206 = vector.load %arg7[%c1_100, %c0_101, %c0_102] : memref<2x1x32xf32, #tpu.memory_space<vmem>>, vector<1x1x32xf32>
    %207 = vector.shape_cast %206 : vector<1x1x32xf32> to vector<1x32xf32>
    %cst_103 = arith.constant dense<0.000000e+00> : vector<16xf32>
    %208 = vector.multi_reduction <add>, %203, %cst_103 [1] : vector<16x32xf32> to vector<16xf32>
    %209 = vector.shape_cast %208 : vector<16xf32> to vector<16x1xf32>
    %cst_104 = arith.constant 3.200000e+01 : f32
    %210 = vector.broadcast %cst_104 : f32 to vector<16x1xf32>
    %211 = arith.divf %209, %210 : vector<16x1xf32>
    %212 = vector.broadcast %211 : vector<16x1xf32> to vector<16x32xf32>
    %213 = arith.subf %203, %212 : vector<16x32xf32>
    %214 = arith.mulf %213, %213 : vector<16x32xf32>
    %cst_105 = arith.constant dense<0.000000e+00> : vector<16xf32>
    %215 = vector.multi_reduction <add>, %214, %cst_105 [1] : vector<16x32xf32> to vector<16xf32>
    %216 = vector.shape_cast %215 : vector<16xf32> to vector<16x1xf32>
    %cst_106 = arith.constant 3.200000e+01 : f32
    %217 = vector.broadcast %cst_106 : f32 to vector<16x1xf32>
    %218 = arith.divf %216, %217 : vector<16x1xf32>
    %219 = vector.broadcast %211 : vector<16x1xf32> to vector<16x32xf32>
    %220 = arith.subf %203, %219 : vector<16x32xf32>
    %cst_107 = arith.constant 9.99999974E-6 : f32
    %221 = vector.broadcast %cst_107 : f32 to vector<16x1xf32>
    %222 = arith.addf %218, %221 : vector<16x1xf32>
    %223 = math.rsqrt %222 : vector<16x1xf32>
    %224 = vector.broadcast %223 : vector<16x1xf32> to vector<16x32xf32>
    %225 = arith.mulf %220, %224 : vector<16x32xf32>
    %226 = vector.broadcast %205 : vector<1x32xf32> to vector<16x32xf32>
    %227 = arith.mulf %225, %226 : vector<16x32xf32>
    %228 = vector.broadcast %207 : vector<1x32xf32> to vector<16x32xf32>
    %229 = arith.addf %227, %228 : vector<16x32xf32>
    %230 = arith.truncf %229 : vector<16x32xf32> to vector<16x32xbf16>
    %c1_108 = arith.constant 1 : index
    %c0_109 = arith.constant 0 : index
    %c0_110 = arith.constant 0 : index
    %231 = vector.load %arg8[%c1_108, %c0_109, %c0_110] : memref<2x32x96xbf16, #tpu.memory_space<vmem>>, vector<1x32x96xbf16>
    %232 = vector.shape_cast %231 : vector<1x32x96xbf16> to vector<32x96xbf16>
    %cst_111 = arith.constant dense<0.000000e+00> : vector<16x96xf32>
    %233 = tpu.matmul %230, %232, %cst_111 {dimension_numbers = #tpu.dot_dimension_numbers<[1], [0], [0], [1], [0, 0, 1, 1], [], []>} : vector<16x32xbf16>, vector<32x96xbf16>, vector<16x96xf32> -> vector<16x96xf32>
    %c1_112 = arith.constant 1 : index
    %c0_113 = arith.constant 0 : index
    %c0_114 = arith.constant 0 : index
    %234 = vector.load %arg9[%c1_112, %c0_113, %c0_114] : memref<2x1x96xf32, #tpu.memory_space<vmem>>, vector<1x1x96xf32>
    %235 = vector.shape_cast %234 : vector<1x1x96xf32> to vector<1x96xf32>
    %236 = vector.broadcast %235 : vector<1x96xf32> to vector<16x96xf32>
    %237 = arith.addf %233, %236 : vector<16x96xf32>
    %238 = arith.truncf %237 : vector<16x96xf32> to vector<16x96xbf16>
    %239 = vector.extract_strided_slice %238 {offsets = [0, 0], sizes = [16, 32], strides = [1, 1]} : vector<16x96xbf16> to vector<16x32xbf16>
    %240 = vector.extract_strided_slice %238 {offsets = [0, 32], sizes = [16, 32], strides = [1, 1]} : vector<16x96xbf16> to vector<16x32xbf16>
    %241 = vector.extract_strided_slice %238 {offsets = [0, 64], sizes = [16, 32], strides = [1, 1]} : vector<16x96xbf16> to vector<16x32xbf16>
    %242 = vector.extract_strided_slice %239 {offsets = [0, 0], sizes = [16, 8], strides = [1, 1]} : vector<16x32xbf16> to vector<16x8xbf16>
    %243 = vector.extract_strided_slice %240 {offsets = [0, 0], sizes = [16, 8], strides = [1, 1]} : vector<16x32xbf16> to vector<16x8xbf16>
    %cst_115 = arith.constant dense<0.000000e+00> : vector<16x16xf32>
    %244 = tpu.matmul %242, %243, %cst_115 {dimension_numbers = #tpu.dot_dimension_numbers<[1], [1], [0], [0], [0, 0, 1, 0], [], []>} : vector<16x8xbf16>, vector<16x8xbf16>, vector<16x16xf32> -> vector<16x16xf32>
    %245 = arith.addf %244, %30 : vector<16x16xf32>
    %cst_116 = arith.constant dense<0xFF800000> : vector<16xf32>
    %246 = vector.multi_reduction <maximumf>, %245, %cst_116 [1] : vector<16x16xf32> to vector<16xf32>
    %247 = vector.shape_cast %246 : vector<16xf32> to vector<16x1xf32>
    %248 = vector.broadcast %247 : vector<16x1xf32> to vector<16x16xf32>
    %249 = arith.subf %245, %248 : vector<16x16xf32>
    %250 = math.exp %249 : vector<16x16xf32>
    %cst_117 = arith.constant dense<0.000000e+00> : vector<16xf32>
    %251 = vector.multi_reduction <add>, %250, %cst_117 [1] : vector<16x16xf32> to vector<16xf32>
    %252 = vector.shape_cast %251 : vector<16xf32> to vector<16x1xf32>
    %253 = tpu.reciprocal %252 {approx = true} : vector<16x1xf32> -> vector<16x1xf32>
    %254 = vector.broadcast %253 : vector<16x1xf32> to vector<16x16xf32>
    %255 = arith.mulf %250, %254 : vector<16x16xf32>
    %256 = arith.truncf %255 : vector<16x16xf32> to vector<16x16xbf16>
    %257 = vector.extract_strided_slice %241 {offsets = [0, 0], sizes = [16, 8], strides = [1, 1]} : vector<16x32xbf16> to vector<16x8xbf16>
    %cst_118 = arith.constant dense<0.000000e+00> : vector<16x8xf32>
    %258 = tpu.matmul %256, %257, %cst_118 {dimension_numbers = #tpu.dot_dimension_numbers<[1], [0], [0], [1], [0, 0, 1, 1], [], []>} : vector<16x16xbf16>, vector<16x8xbf16>, vector<16x8xf32> -> vector<16x8xf32>
    %259 = vector.extract_strided_slice %239 {offsets = [0, 8], sizes = [16, 8], strides = [1, 1]} : vector<16x32xbf16> to vector<16x8xbf16>
    %260 = vector.extract_strided_slice %240 {offsets = [0, 8], sizes = [16, 8], strides = [1, 1]} : vector<16x32xbf16> to vector<16x8xbf16>
    %cst_119 = arith.constant dense<0.000000e+00> : vector<16x16xf32>
    %261 = tpu.matmul %259, %260, %cst_119 {dimension_numbers = #tpu.dot_dimension_numbers<[1], [1], [0], [0], [0, 0, 1, 0], [], []>} : vector<16x8xbf16>, vector<16x8xbf16>, vector<16x16xf32> -> vector<16x16xf32>
    %262 = arith.addf %261, %30 : vector<16x16xf32>
    %cst_120 = arith.constant dense<0xFF800000> : vector<16xf32>
    %263 = vector.multi_reduction <maximumf>, %262, %cst_120 [1] : vector<16x16xf32> to vector<16xf32>
    %264 = vector.shape_cast %263 : vector<16xf32> to vector<16x1xf32>
    %265 = vector.broadcast %264 : vector<16x1xf32> to vector<16x16xf32>
    %266 = arith.subf %262, %265 : vector<16x16xf32>
    %267 = math.exp %266 : vector<16x16xf32>
    %cst_121 = arith.constant dense<0.000000e+00> : vector<16xf32>
    %268 = vector.multi_reduction <add>, %267, %cst_121 [1] : vector<16x16xf32> to vector<16xf32>
    %269 = vector.shape_cast %268 : vector<16xf32> to vector<16x1xf32>
    %270 = tpu.reciprocal %269 {approx = true} : vector<16x1xf32> -> vector<16x1xf32>
    %271 = vector.broadcast %270 : vector<16x1xf32> to vector<16x16xf32>
    %272 = arith.mulf %267, %271 : vector<16x16xf32>
    %273 = arith.truncf %272 : vector<16x16xf32> to vector<16x16xbf16>
    %274 = vector.extract_strided_slice %241 {offsets = [0, 8], sizes = [16, 8], strides = [1, 1]} : vector<16x32xbf16> to vector<16x8xbf16>
    %cst_122 = arith.constant dense<0.000000e+00> : vector<16x8xf32>
    %275 = tpu.matmul %273, %274, %cst_122 {dimension_numbers = #tpu.dot_dimension_numbers<[1], [0], [0], [1], [0, 0, 1, 1], [], []>} : vector<16x16xbf16>, vector<16x8xbf16>, vector<16x8xf32> -> vector<16x8xf32>
    %276 = vector.extract_strided_slice %239 {offsets = [0, 16], sizes = [16, 8], strides = [1, 1]} : vector<16x32xbf16> to vector<16x8xbf16>
    %277 = vector.extract_strided_slice %240 {offsets = [0, 16], sizes = [16, 8], strides = [1, 1]} : vector<16x32xbf16> to vector<16x8xbf16>
    %cst_123 = arith.constant dense<0.000000e+00> : vector<16x16xf32>
    %278 = tpu.matmul %276, %277, %cst_123 {dimension_numbers = #tpu.dot_dimension_numbers<[1], [1], [0], [0], [0, 0, 1, 0], [], []>} : vector<16x8xbf16>, vector<16x8xbf16>, vector<16x16xf32> -> vector<16x16xf32>
    %279 = arith.addf %278, %30 : vector<16x16xf32>
    %cst_124 = arith.constant dense<0xFF800000> : vector<16xf32>
    %280 = vector.multi_reduction <maximumf>, %279, %cst_124 [1] : vector<16x16xf32> to vector<16xf32>
    %281 = vector.shape_cast %280 : vector<16xf32> to vector<16x1xf32>
    %282 = vector.broadcast %281 : vector<16x1xf32> to vector<16x16xf32>
    %283 = arith.subf %279, %282 : vector<16x16xf32>
    %284 = math.exp %283 : vector<16x16xf32>
    %cst_125 = arith.constant dense<0.000000e+00> : vector<16xf32>
    %285 = vector.multi_reduction <add>, %284, %cst_125 [1] : vector<16x16xf32> to vector<16xf32>
    %286 = vector.shape_cast %285 : vector<16xf32> to vector<16x1xf32>
    %287 = tpu.reciprocal %286 {approx = true} : vector<16x1xf32> -> vector<16x1xf32>
    %288 = vector.broadcast %287 : vector<16x1xf32> to vector<16x16xf32>
    %289 = arith.mulf %284, %288 : vector<16x16xf32>
    %290 = arith.truncf %289 : vector<16x16xf32> to vector<16x16xbf16>
    %291 = vector.extract_strided_slice %241 {offsets = [0, 16], sizes = [16, 8], strides = [1, 1]} : vector<16x32xbf16> to vector<16x8xbf16>
    %cst_126 = arith.constant dense<0.000000e+00> : vector<16x8xf32>
    %292 = tpu.matmul %290, %291, %cst_126 {dimension_numbers = #tpu.dot_dimension_numbers<[1], [0], [0], [1], [0, 0, 1, 1], [], []>} : vector<16x16xbf16>, vector<16x8xbf16>, vector<16x8xf32> -> vector<16x8xf32>
    %293 = vector.extract_strided_slice %239 {offsets = [0, 24], sizes = [16, 8], strides = [1, 1]} : vector<16x32xbf16> to vector<16x8xbf16>
    %294 = vector.extract_strided_slice %240 {offsets = [0, 24], sizes = [16, 8], strides = [1, 1]} : vector<16x32xbf16> to vector<16x8xbf16>
    %cst_127 = arith.constant dense<0.000000e+00> : vector<16x16xf32>
    %295 = tpu.matmul %293, %294, %cst_127 {dimension_numbers = #tpu.dot_dimension_numbers<[1], [1], [0], [0], [0, 0, 1, 0], [], []>} : vector<16x8xbf16>, vector<16x8xbf16>, vector<16x16xf32> -> vector<16x16xf32>
    %296 = arith.addf %295, %30 : vector<16x16xf32>
    %cst_128 = arith.constant dense<0xFF800000> : vector<16xf32>
    %297 = vector.multi_reduction <maximumf>, %296, %cst_128 [1] : vector<16x16xf32> to vector<16xf32>
    %298 = vector.shape_cast %297 : vector<16xf32> to vector<16x1xf32>
    %299 = vector.broadcast %298 : vector<16x1xf32> to vector<16x16xf32>
    %300 = arith.subf %296, %299 : vector<16x16xf32>
    %301 = math.exp %300 : vector<16x16xf32>
    %cst_129 = arith.constant dense<0.000000e+00> : vector<16xf32>
    %302 = vector.multi_reduction <add>, %301, %cst_129 [1] : vector<16x16xf32> to vector<16xf32>
    %303 = vector.shape_cast %302 : vector<16xf32> to vector<16x1xf32>
    %304 = tpu.reciprocal %303 {approx = true} : vector<16x1xf32> -> vector<16x1xf32>
    %305 = vector.broadcast %304 : vector<16x1xf32> to vector<16x16xf32>
    %306 = arith.mulf %301, %305 : vector<16x16xf32>
    %307 = arith.truncf %306 : vector<16x16xf32> to vector<16x16xbf16>
    %308 = vector.extract_strided_slice %241 {offsets = [0, 24], sizes = [16, 8], strides = [1, 1]} : vector<16x32xbf16> to vector<16x8xbf16>
    %cst_130 = arith.constant dense<0.000000e+00> : vector<16x8xf32>
    %309 = tpu.matmul %307, %308, %cst_130 {dimension_numbers = #tpu.dot_dimension_numbers<[1], [0], [0], [1], [0, 0, 1, 1], [], []>} : vector<16x16xbf16>, vector<16x8xbf16>, vector<16x8xf32> -> vector<16x8xf32>
    %310 = tpu.concatenate %258, %275, %292, %309 in 1 : vector<16x8xf32>, vector<16x8xf32>, vector<16x8xf32>, vector<16x8xf32> -> vector<16x32xf32>
    %311 = arith.truncf %310 : vector<16x32xf32> to vector<16x32xbf16>
    %c1_131 = arith.constant 1 : index
    %c0_132 = arith.constant 0 : index
    %c0_133 = arith.constant 0 : index
    %312 = vector.load %arg10[%c1_131, %c0_132, %c0_133] : memref<2x32x32xbf16, #tpu.memory_space<vmem>>, vector<1x32x32xbf16>
    %313 = vector.shape_cast %312 : vector<1x32x32xbf16> to vector<32x32xbf16>
    %cst_134 = arith.constant dense<0.000000e+00> : vector<16x32xf32>
    %314 = tpu.matmul %311, %313, %cst_134 {dimension_numbers = #tpu.dot_dimension_numbers<[1], [0], [0], [1], [0, 0, 1, 1], [], []>} : vector<16x32xbf16>, vector<32x32xbf16>, vector<16x32xf32> -> vector<16x32xf32>
    %c1_135 = arith.constant 1 : index
    %c0_136 = arith.constant 0 : index
    %c0_137 = arith.constant 0 : index
    %315 = vector.load %arg11[%c1_135, %c0_136, %c0_137] : memref<2x1x32xf32, #tpu.memory_space<vmem>>, vector<1x1x32xf32>
    %316 = vector.shape_cast %315 : vector<1x1x32xf32> to vector<1x32xf32>
    %317 = vector.broadcast %316 : vector<1x32xf32> to vector<16x32xf32>
    %318 = arith.addf %314, %317 : vector<16x32xf32>
    %c0_138 = arith.constant 0 : index
    %c0_139 = arith.constant 0 : index
    %319 = vector.load %arg22[%c0_138, %c0_139] : memref<16x32xf32, #tpu.memory_space<vmem>>, vector<16x32xf32>
    %320 = arith.addf %319, %318 : vector<16x32xf32>
    %c0_140 = arith.constant 0 : index
    %c0_141 = arith.constant 0 : index
    %321 = vector.load %arg22[%c0_140, %c0_141] : memref<16x32xf32, #tpu.memory_space<vmem>>, vector<16x32xf32>
    tpu.vector_store %arg22[%c0_140, %c0_141], %320 {strides = array<i32>} : memref<16x32xf32, #tpu.memory_space<vmem>>, vector<16x32xf32>,
    %c0_142 = arith.constant 0 : index
    %c0_143 = arith.constant 0 : index
    %322 = vector.load %arg22[%c0_142, %c0_143] : memref<16x32xf32, #tpu.memory_space<vmem>>, vector<16x32xf32>
    %c1_144 = arith.constant 1 : index
    %c0_145 = arith.constant 0 : index
    %c0_146 = arith.constant 0 : index
    %323 = vector.load %arg12[%c1_144, %c0_145, %c0_146] : memref<2x1x32xf32, #tpu.memory_space<vmem>>, vector<1x1x32xf32>
    %324 = vector.shape_cast %323 : vector<1x1x32xf32> to vector<1x32xf32>
    %c1_147 = arith.constant 1 : index
    %c0_148 = arith.constant 0 : index
    %c0_149 = arith.constant 0 : index
    %325 = vector.load %arg13[%c1_147, %c0_148, %c0_149] : memref<2x1x32xf32, #tpu.memory_space<vmem>>, vector<1x1x32xf32>
    %326 = vector.shape_cast %325 : vector<1x1x32xf32> to vector<1x32xf32>
    %cst_150 = arith.constant dense<0.000000e+00> : vector<16xf32>
    %327 = vector.multi_reduction <add>, %322, %cst_150 [1] : vector<16x32xf32> to vector<16xf32>
    %328 = vector.shape_cast %327 : vector<16xf32> to vector<16x1xf32>
    %cst_151 = arith.constant 3.200000e+01 : f32
    %329 = vector.broadcast %cst_151 : f32 to vector<16x1xf32>
    %330 = arith.divf %328, %329 : vector<16x1xf32>
    %331 = vector.broadcast %330 : vector<16x1xf32> to vector<16x32xf32>
    %332 = arith.subf %322, %331 : vector<16x32xf32>
    %333 = arith.mulf %332, %332 : vector<16x32xf32>
    %cst_152 = arith.constant dense<0.000000e+00> : vector<16xf32>
    %334 = vector.multi_reduction <add>, %333, %cst_152 [1] : vector<16x32xf32> to vector<16xf32>
    %335 = vector.shape_cast %334 : vector<16xf32> to vector<16x1xf32>
    %cst_153 = arith.constant 3.200000e+01 : f32
    %336 = vector.broadcast %cst_153 : f32 to vector<16x1xf32>
    %337 = arith.divf %335, %336 : vector<16x1xf32>
    %338 = vector.broadcast %330 : vector<16x1xf32> to vector<16x32xf32>
    %339 = arith.subf %322, %338 : vector<16x32xf32>
    %cst_154 = arith.constant 9.99999974E-6 : f32
    %340 = vector.broadcast %cst_154 : f32 to vector<16x1xf32>
    %341 = arith.addf %337, %340 : vector<16x1xf32>
    %342 = math.rsqrt %341 : vector<16x1xf32>
    %343 = vector.broadcast %342 : vector<16x1xf32> to vector<16x32xf32>
    %344 = arith.mulf %339, %343 : vector<16x32xf32>
    %345 = vector.broadcast %324 : vector<1x32xf32> to vector<16x32xf32>
    %346 = arith.mulf %344, %345 : vector<16x32xf32>
    %347 = vector.broadcast %326 : vector<1x32xf32> to vector<16x32xf32>
    %348 = arith.addf %346, %347 : vector<16x32xf32>
    %349 = arith.truncf %348 : vector<16x32xf32> to vector<16x32xbf16>
    %c1_155 = arith.constant 1 : index
    %c0_156 = arith.constant 0 : index
    %c0_157 = arith.constant 0 : index
    %350 = vector.load %arg14[%c1_155, %c0_156, %c0_157] : memref<2x32x128xbf16, #tpu.memory_space<vmem>>, vector<1x32x128xbf16>
    %351 = vector.shape_cast %350 : vector<1x32x128xbf16> to vector<32x128xbf16>
    %cst_158 = arith.constant dense<0.000000e+00> : vector<16x128xf32>
    %352 = tpu.matmul %349, %351, %cst_158 {dimension_numbers = #tpu.dot_dimension_numbers<[1], [0], [0], [1], [0, 0, 1, 1], [], []>} : vector<16x32xbf16>, vector<32x128xbf16>, vector<16x128xf32> -> vector<16x128xf32>
    %c1_159 = arith.constant 1 : index
    %c0_160 = arith.constant 0 : index
    %c0_161 = arith.constant 0 : index
    %353 = vector.load %arg15[%c1_159, %c0_160, %c0_161] : memref<2x1x128xf32, #tpu.memory_space<vmem>>, vector<1x1x128xf32>
    %354 = vector.shape_cast %353 : vector<1x1x128xf32> to vector<1x128xf32>
    %355 = vector.broadcast %354 : vector<1x128xf32> to vector<16x128xf32>
    %356 = arith.addf %352, %355 : vector<16x128xf32>
    %cst_162 = arith.constant 1.702000e+00 : f32
    %357 = vector.broadcast %cst_162 : f32 to vector<16x128xf32>
    %358 = arith.mulf %357, %356 : vector<16x128xf32>
    %359 = arith.negf %358 : vector<16x128xf32>
    %360 = math.exp %359 : vector<16x128xf32>
    %cst_163 = arith.constant 1.000000e+00 : f32
    %361 = vector.broadcast %cst_163 : f32 to vector<16x128xf32>
    %362 = arith.addf %361, %360 : vector<16x128xf32>
    %363 = arith.divf %361, %362 : vector<16x128xf32>
    %364 = arith.mulf %356, %363 : vector<16x128xf32>
    %365 = arith.truncf %364 : vector<16x128xf32> to vector<16x128xbf16>
    %c1_164 = arith.constant 1 : index
    %c0_165 = arith.constant 0 : index
    %c0_166 = arith.constant 0 : index
    %366 = vector.load %arg16[%c1_164, %c0_165, %c0_166] : memref<2x128x32xbf16, #tpu.memory_space<vmem>>, vector<1x128x32xbf16>
    %367 = vector.shape_cast %366 : vector<1x128x32xbf16> to vector<128x32xbf16>
    %cst_167 = arith.constant dense<0.000000e+00> : vector<16x32xf32>
    %368 = tpu.matmul %365, %367, %cst_167 {dimension_numbers = #tpu.dot_dimension_numbers<[1], [0], [0], [1], [0, 0, 1, 1], [], []>} : vector<16x128xbf16>, vector<128x32xbf16>, vector<16x32xf32> -> vector<16x32xf32>
    %c1_168 = arith.constant 1 : index
    %c0_169 = arith.constant 0 : index
    %c0_170 = arith.constant 0 : index
    %369 = vector.load %arg17[%c1_168, %c0_169, %c0_170] : memref<2x1x32xf32, #tpu.memory_space<vmem>>, vector<1x1x32xf32>
    %370 = vector.shape_cast %369 : vector<1x1x32xf32> to vector<1x32xf32>
    %371 = vector.broadcast %370 : vector<1x32xf32> to vector<16x32xf32>
    %372 = arith.addf %368, %371 : vector<16x32xf32>
    %373 = arith.addf %322, %372 : vector<16x32xf32>
    %c0_171 = arith.constant 0 : index
    %c0_172 = arith.constant 0 : index
    %374 = vector.load %arg22[%c0_171, %c0_172] : memref<16x32xf32, #tpu.memory_space<vmem>>, vector<16x32xf32>
    tpu.vector_store %arg22[%c0_171, %c0_172], %373 {strides = array<i32>} : memref<16x32xf32, #tpu.memory_space<vmem>>, vector<16x32xf32>,
    %c0_173 = arith.constant 0 : index
    %c0_174 = arith.constant 0 : index
    %375 = vector.load %arg22[%c0_173, %c0_174] : memref<16x32xf32, #tpu.memory_space<vmem>>, vector<1x32xf32>
    %c8 = arith.constant 8 : index
    %c0_175 = arith.constant 0 : index
    %376 = vector.load %arg22[%c8, %c0_175] : memref<16x32xf32, #tpu.memory_space<vmem>>, vector<1x32xf32>
    %377 = tpu.concatenate %375, %376 in 0 : vector<1x32xf32>, vector<1x32xf32> -> vector<2x32xf32>
    %c0_176 = arith.constant 0 : index
    %c0_177 = arith.constant 0 : index
    %378 = vector.load %arg18[%c0_176, %c0_177] : memref<1x32xf32, #tpu.memory_space<vmem>>, vector<1x32xf32>
    %c0_178 = arith.constant 0 : index
    %c0_179 = arith.constant 0 : index
    %379 = vector.load %arg19[%c0_178, %c0_179] : memref<1x32xf32, #tpu.memory_space<vmem>>, vector<1x32xf32>
    %cst_180 = arith.constant dense<0.000000e+00> : vector<2xf32>
    %380 = vector.multi_reduction <add>, %377, %cst_180 [1] : vector<2x32xf32> to vector<2xf32>
    %381 = vector.shape_cast %380 : vector<2xf32> to vector<2x1xf32>
    %cst_181 = arith.constant 3.200000e+01 : f32
    %382 = vector.broadcast %cst_181 : f32 to vector<2x1xf32>
    %383 = arith.divf %381, %382 : vector<2x1xf32>
    %384 = vector.broadcast %383 : vector<2x1xf32> to vector<2x32xf32>
    %385 = arith.subf %377, %384 : vector<2x32xf32>
    %386 = arith.mulf %385, %385 : vector<2x32xf32>
    %cst_182 = arith.constant dense<0.000000e+00> : vector<2xf32>
    %387 = vector.multi_reduction <add>, %386, %cst_182 [1] : vector<2x32xf32> to vector<2xf32>
    %388 = vector.shape_cast %387 : vector<2xf32> to vector<2x1xf32>
    %cst_183 = arith.constant 3.200000e+01 : f32
    %389 = vector.broadcast %cst_183 : f32 to vector<2x1xf32>
    %390 = arith.divf %388, %389 : vector<2x1xf32>
    %391 = vector.broadcast %383 : vector<2x1xf32> to vector<2x32xf32>
    %392 = arith.subf %377, %391 : vector<2x32xf32>
    %cst_184 = arith.constant 9.99999974E-6 : f32
    %393 = vector.broadcast %cst_184 : f32 to vector<2x1xf32>
    %394 = arith.addf %390, %393 : vector<2x1xf32>
    %395 = math.rsqrt %394 : vector<2x1xf32>
    %396 = vector.broadcast %395 : vector<2x1xf32> to vector<2x32xf32>
    %397 = arith.mulf %392, %396 : vector<2x32xf32>
    %398 = vector.broadcast %378 : vector<1x32xf32> to vector<2x32xf32>
    %399 = arith.mulf %397, %398 : vector<2x32xf32>
    %400 = vector.broadcast %379 : vector<1x32xf32> to vector<2x32xf32>
    %401 = arith.addf %399, %400 : vector<2x32xf32>
    %402 = arith.truncf %401 : vector<2x32xf32> to vector<2x32xbf16>
    %c0_185 = arith.constant 0 : index
    %c0_186 = arith.constant 0 : index
    %403 = vector.load %arg20[%c0_185, %c0_186] : memref<32x128xbf16, #tpu.memory_space<vmem>>, vector<32x128xbf16>
    %cst_187 = arith.constant dense<0.000000e+00> : vector<2x128xf32>
    %404 = tpu.matmul %402, %403, %cst_187 {dimension_numbers = #tpu.dot_dimension_numbers<[1], [0], [0], [1], [0, 0, 1, 1], [], []>} : vector<2x32xbf16>, vector<32x128xbf16>, vector<2x128xf32> -> vector<2x128xf32>
    %c0_188 = arith.constant 0 : index
    %c0_189 = arith.constant 0 : index
    %405 = vector.load %arg21[%c0_188, %c0_189] : memref<2x128xf32, #tpu.memory_space<vmem>>, vector<2x128xf32>
    tpu.vector_store %arg21[%c0_188, %c0_189], %404 {strides = array<i32>} : memref<2x128xf32, #tpu.memory_space<vmem>>, vector<2x128xf32>,
    return
  }
}

</mosaic_0001>

<bundles_post_ra>
// kernel: encode_image.1
= control target key start
LH: loop header
LB: loop body
LE: loop exit
PB: predicated region body
PF: predicated region fallthrough
CT: control target
= control target key end

     0   :  { %s3587_s0 = inlined_call_operand.vmem [shape: bf16[16,192], index: 0, kind: input, shape index: {}]   ;;  %s3588_s1 = inlined_call_operand.vmem [shape: bf16[192,32], index: 1, kind: input, shape index: {}]   ;;  %s3589_s2 = inlined_call_operand.vmem [shape: f32[16,32], index: 2, kind: input, shape index: {}]   ;;  %s3590_s3 = inlined_call_operand.vmem [shape: f32[1,32], index: 3, kind: input, shape index: {}]   ;;  %s3591_s4 = inlined_call_operand.vmem [shape: f32[1,32], index: 4, kind: input, shape index: {}]   ;;  %s3592_s5 = inlined_call_operand.vmem [shape: f32[16,16], index: 5, kind: input, shape index: {}]   ;;  %s3593_s6 = inlined_call_operand.vmem [shape: f32[2,1,32], index: 6, kind: input, shape index: {}]   ;;  %s3594_s7 = inlined_call_operand.vmem [shape: f32[2,1,32], index: 7, kind: input, shape index: {}]   ;;  %s3595_s8 = inlined_call_operand.vmem [shape: bf16[2,32,96], index: 8, kind: input, shape index: {}]   ;;  %s3596_s9 = inlined_call_operand.vmem [shape: f32[2,1,96], index: 9, kind: input, shape index: {}]   ;;  %s3597_s10 = inlined_call_operand.vmem [shape: bf16[2,32,32], index: 10, kind: input, shape index: {}]   ;;  %s3598_s11 = inlined_call_operand.vmem [shape: f32[2,1,32], index: 11, kind: input, shape index: {}]   ;;  %s3599_s12 = inlined_call_operand.vmem [shape: f32[2,1,32], index: 12, kind: input, shape index: {}]   ;;  %s3600_s13 = inlined_call_operand.vmem [shape: f32[2,1,32], index: 13, kind: input, shape index: {}]   ;;  %s3601_s14 = inlined_call_operand.vmem [shape: bf16[2,32,128], index: 14, kind: input, shape index: {}]   ;;  %s3602_s15 = inlined_call_operand.vmem [shape: f32[2,1,128], index: 15, kind: input, shape index: {}]   ;;  %s3603_s16 = inlined_call_operand.vmem [shape: bf16[2,128,32], index: 16, kind: input, shape index: {}]   ;;  %s3604_s17 = inlined_call_operand.vmem [shape: f32[2,1,32], index: 17, kind: input, shape index: {}]   ;;  %s3605_s18 = inlined_call_operand.vmem [shape: f32[1,32], index: 18, kind: input, shape index: {}]   ;;  %s3606_s19 = inlined_call_operand.vmem [shape: f32[1,32], index: 19, kind: input, shape index: {}]   ;;  %s3607_s20 = inlined_call_operand.vmem [shape: bf16[32,128], index: 20, kind: input, shape index: {}]   ;;  %s3608_s21 = inlined_call_operand.hbm [shape: f32[2,128], index: 21, kind: output, shape index: {}]  }
   0x1   :  { %3619 = sst [smem:[#allocation6_spill]] %s3587_s0 }
   0x2   :  { %3620 = sst [smem:[#allocation7_spill]] %s3588_s1 }
   0x3   :  { %3621 = sst [smem:[#allocation8_spill]] %s3589_s2 }
   0x4   :  { %3622 = sst [smem:[#allocation9_spill]] %s3590_s3 }
   0x5   :  { %3623 = sst [smem:[#allocation10_spill]] %s3591_s4 }
   0x6   :  { %3624 = sst [smem:[#allocation11_spill]] %s3592_s5 }
   0x7   :  { %s3625_s26 = sld [smem:[#allocation7_spill]]  ;;  %v2905_v1 = vmov 0   ;;  %vm179_vm0 = vcmask 523264   ;;  %s3626_s1 = sld [smem:[#allocation6_spill]] }
   0x8   :  { %183 = vmatprep.subr.bf16.mxu0 %v2905_v1 }
   0xd   :  { %v2734_v0 = vld [vmem:[%s3625_s26] sm:$0xff]   ;;  %v2735_v2 = vld [vmem:[%s3625_s26 + $0x8] sm:$0xff]   ;;  %v2736_v3 = vld [vmem:[%s3625_s26 + $0x10] sm:$0xff]  }
   0xe   :  { %184 = vmatpush1.bf16.msra.mxu0 %v2734_v0  ;;  %v2737_v4 = vld [vmem:[%s3625_s26 + $0x18] sm:$0xff]   ;;  %v2738_v5 = vld [vmem:[%s3625_s26 + $0x20] sm:$0xff]   ;;  %v2739_v7 = vld [vmem:[%s3625_s26 + $0x28] sm:$0xff]  }
   0xf   :  { %185 = vmatprep.subr.bf16.mxu0 %v2905_v1  ;;  %v2748_v6 = vld [vmem:[%s3626_s1 + $0x4] ss:$8 sps:$4 sm:$0xff]   ;;  %v2740_v8 = vld [vmem:[%s3625_s26 + $0x30] sm:$0xff]   ;;  %v2741_v9 = vld [vmem:[%s3625_s26 + $0x38] sm:$0xff]  }
  0x10   :  { %2309 = vmatprep.mubr.msk.bf16.mxu0 %vm179_vm0, %v2748_v6  ;;  %v2742_v10 = vld [vmem:[%s3625_s26 + $0x40] sm:$0xff]  }
  0x12   :  { %186 = vmatpush1.bf16.msra.mxu0 %v2735_v2 }
  0x13   :  { %187 = vmatprep.subr.bf16.mxu0 %v2905_v1 }
  0x16   :  { %188 = vmatpush1.bf16.msra.mxu0 %v2736_v3 }
  0x17   :  { %189 = vmatprep.subr.bf16.mxu0 %v2905_v1 }
  0x1a   :  { %190 = vmatpush1.bf16.msra.mxu0 %v2737_v4 }
  0x1b   :  { %191 = vmatprep.subr.bf16.mxu0 %v2905_v1 }
  0x1e   :  { %192 = vmatpush1.bf16.msra.mxu0 %v2738_v5 }
  0x1f   :  { %193 = vmatprep.subr.bf16.mxu0 %v2905_v1 }
  0x22   :  { %194 = vmatpush1.bf16.msra.mxu0 %v2739_v7 }
  0x23   :  { %195 = vmatprep.subr.bf16.mxu0 %v2905_v1 }
  0x26   :  { %196 = vmatpush1.bf16.msra.mxu0 %v2740_v8 }
  0x27   :  { %197 = vmatprep.subr.bf16.mxu0 %v2905_v1 }
  0x2a   :  { %198 = vmatpush1.bf16.msra.mxu0 %v2741_v9 }
  0x2b   :  { %199 = vmatprep.subr.bf16.mxu0 %v2905_v1 }
  0x2c   :  { %26 = vsyncpa [#allocation4], 0  ;;  %v2743_v11 = vld [vmem:[%s3625_s26 + $0x48] sm:$0xff]   ;;  %v2744_v12 = vld [vmem:[%s3625_s26 + $0x50] sm:$0xff]   ;;  %s3627_s28 = sld [smem:[#allocation8_spill]]  ;;  %vm226_vm1 = vcmask 261120  }
  0x2d   :  { %v2745_v13 = vld [vmem:[%s3625_s26 + $0x58] sm:$0xff]   ;;  %v2746_v14 = vld [vmem:[%s3626_s1] ss:$8 sps:$4 sm:$0xff]   ;;  %s3628_s4 = sld [smem:[#allocation9_spill]]  ;;  %s3629_s22 = sld [smem:[#allocation10_spill]]  ;;  %v2906_v2 = vmov 0.0  }
  0x2e   :  { %200 = vmatpush1.bf16.msra.mxu0 %v2742_v10  ;;  %2494 = vmatprep.subr.bf16.mxu1 %v2906_v2  ;;  %v2750_v3 = vld [vmem:[%s3595_s8 + $0x8] sm:$0xff]   ;;  %vm2907_vm2 = vmmov 0   ;;  %s2908_s1 = smov 96   ;;  %s2910_s30 = smov 120   ;;  %vm392_vm3 = vcmask 64512   ;;  %vm440_vm4 = vcmask 130048  }
  0x2f   :  { %201 = vmatprep.subr.bf16.mxu0 %v2905_v1  ;;  %2498 = vmatprep.mubr.msk.bf16.mxu1 %vm2907_vm2, %v2906_v2  ;;  %s3630_s23 = sld [smem:[#allocation11_spill]]  ;;  %s2911_s25 = smov 64   ;;  %vm902_vm5 = vcmask 195584   ;;  %vm2188_vm6 = vcmask 1040384   ;;  %vm2192_vm7 = vcmask 254976  }
  0x30   :  { %s2912_s27 = smov 80   ;;  %s2913_s3 = smov 112  }
  0x31   :  { %s3618_s29 = smov 48   ;;  %s2916_s0 = smov 104  }
  0x32   :  { %202 = vmatpush1.bf16.msra.mxu0 %v2743_v11  ;;  %v96_v15 = vld [vmem:[%s3627_s28] sm:$0xff]  ;;  %v97_v17 = vld [vmem:[%s3627_s28 + $0x8] sm:$0xff]  ;;  %s3617_s28 = smov 56   ;;  %s2917_s26 = smov 72  }
  0x33   :  { %203 = vmatprep.subr.bf16.mxu0 %v2905_v1  ;;  %v2310_v42 = vld [vmem:[%s3628_s4] ss:$0 sm:$0xff]  ;;  %s2909_s4 = smov 88   ;;  %s3614_s5 = smov 8  }
  0x34   :  { %v2311_v44 = vld [vmem:[%s3629_s22] ss:$0 sm:$0xff]  ;;  %s3615_s22 = smov 40  }
  0x36   :  { %204 = vmatpush1.bf16.msra.mxu0 %v2744_v12  ;;  %v2312_v12 = vld [vmem:[%s3593_s6] ss:$0 sm:$0xff] }
  0x37   :  { %205 = vmatprep.subr.bf16.mxu0 %v2905_v1  ;;  %v2749_v1 = vld [vmem:[%s3595_s8] sm:$0xff]  }
  0x38   :  { %2495 = vmatpush3.bf16.msra.mxu1 %v2749_v1 }
  0x39   :  { %2496 = vmatprep.subr.bf16.mxu1 %v2906_v2 }
  0x3a   :  { %206 = vmatpush1.bf16.msra.mxu0 %v2745_v13 }
  0x3b   :  { %2544 = vmatprep.subr.bf16.mxu0 %v2906_v2 }
  0x3c   :  { %2497 = vmatpush3.bf16.msra.mxu1 %v2750_v3 }
  0x3d   :  { %216 = vmatmul.mubr.bf16.vlgmr.msra.gmra.mrb[0].mxu0 %v2746_v14  ;;  %2502 = vmatprep.subr.bf16.mxu1 %v2906_v2 }
  0x3e   :  { %2546 = vmatprep.mubr.msk.bf16.mxu0 %vm2907_vm2, %v2906_v2 }
 0x110   :  { %v217_v16 = vpop.f32.mrb[0].mxu0 }
 0x111   :  { %v218_v18 = vadd.f32 %v217_v16, %v96_v15  ;;  %v219_v19 = vpop.f32.mrb[1].mxu0  ;;  %v2313_v16 = vld [vmem:[%s3594_s7] ss:$0 sm:$0xff] }
 0x112   :  { %v220_v20 = vpop.f32.mrb[2].mxu0 }
 0x113   :  { %v221_v21 = vadd.f32 %v220_v20, %v97_v17  ;;  %v222_v22 = vpop.f32.mrb[3].mxu0  ;;  %v227_v23 = vsel %vm226_vm1, %v218_v18, 0.0 }
 0x114   :  { %228 = vadd.xlane.f32.xlu0 %v227_v23 }
 0x115   :  { %v230_v24 = vsel %vm226_vm1, %v221_v21, 0.0 }
 0x118   :  { %231 = vadd.xlane.f32.xlu0 %v230_v24 }
 0x1a1   :  { %v229_v25 = vpop.xlane.xlu0 %228 }
 0x1a2   :  { %v234_v26 = vmul.f32 0.03125, %v229_v25 }
 0x1a4   :  { %v236_v27 = vsub.f32 %v218_v18, %v234_v26 }
 0x1a5   :  { %v232_v28 = vpop.xlane.xlu0 %231 }
 0x1a6   :  { %v235_v29 = vmul.f32 0.03125, %v232_v28  ;;  %v238_v30 = vmul.f32 %v236_v27, %v236_v27 }
 0x1a8   :  { %v237_v31 = vsub.f32 %v221_v21, %v235_v29  ;;  %v240_v32 = vsel %vm226_vm1, %v238_v30, 0.0  ;;  %v2314_v21 = vld [vmem:[%s3596_s9] ss:$0 sm:$0xff] }
 0x1a9   :  { %241 = vadd.xlane.f32.xlu1 %v240_v32 }
 0x1aa   :  { %v239_v33 = vmul.f32 %v237_v31, %v237_v31 }
 0x1ac   :  { %v243_v34 = vsel %vm226_vm1, %v239_v33, 0.0  ;;  %v3153_v33 = vld [vmem:[%s3630_s23 + $0x8] sm:$0xff] }
 0x1ad   :  { %244 = vadd.xlane.f32.xlu1 %v243_v34 }
 0x236   :  { %v242_v35 = vpop.xlane.xlu1 %241 }
 0x237   :  { %v246_v36 = vmul.f32 0.03125, %v242_v35 }
 0x239   :  { %v248_v37 = vadd.f32 1e-05, %v246_v36 }
 0x23a   :  { %v245_v38 = vpop.xlane.xlu1 %244 }
 0x23b   :  { %2779 = vrsqrt.f32 %v248_v37  ;;  %v247_v39 = vmul.f32 0.03125, %v245_v38 }
 0x23d   :  { %v249_v40 = vadd.f32 1e-05, %v247_v39 }
 0x23f   :  { %2781 = vrsqrt.f32 %v249_v40 }
 0x245   :  { %v2780_v41 = vpop.eup %2779 }
 0x246   :  { %v252_v43 = vmul.f32 %v2780_v41, %v236_v27 }
 0x248   :  { %v260_v45 = vmul.f32 %v2310_v42, %v252_v43 }
 0x249   :  { %v2782_v46 = vpop.eup %2781 }
 0x24a   :  { %v268_v47 = vadd.f32 %v2311_v44, %v260_v45  ;;  %v253_v48 = vmul.f32 %v2782_v46, %v237_v31  ;;  %v3148_v31 = vld [vmem:[%s3630_s23] sm:$0xff]  ;;  %s3613_s23 = smov 16  }
 0x24c   :  { %270 = vst.msk [vmem:[#allocation2] sm:$0xff] %vm226_vm1, %v268_v47  ;;  %v261_v49 = vmul.f32 %v2310_v42, %v253_v48 }
 0x24e   :  { %v269_v50 = vadd.f32 %v2311_v44, %v261_v49 }
 0x250   :  { %271 = vst.msk [vmem:[#allocation2 + $0x8] sm:$0xff] %vm226_vm1, %v269_v50 }
 0x253   :  { %v3093_v51 = vld [vmem:[#allocation2] sm:$0xff] }
 0x254   :  { %v278_v52 = vsel %vm226_vm1, %v3093_v51, 0.0 }
 0x255   :  { %279 = vadd.xlane.f32.xlu0 %v278_v52 }
 0x257   :  { %v3097_v53 = vld [vmem:[#allocation2 + $0x8] sm:$0xff] }
 0x258   :  { %v281_v54 = vsel %vm226_vm1, %v3097_v53, 0.0 }
 0x259   :  { %282 = vadd.xlane.f32.xlu1 %v281_v54 }
 0x2e2   :  { %v280_v55 = vpop.xlane.xlu0 %279 }
 0x2e3   :  { %v284_v56 = vmul.f32 0.03125, %v280_v55 }
 0x2e5   :  { %v286_v57 = vsub.f32 %v3093_v51, %v284_v56 }
 0x2e6   :  { %v283_v58 = vpop.xlane.xlu1 %282 }
 0x2e7   :  { %v285_v59 = vmul.f32 0.03125, %v283_v58  ;;  %v288_v60 = vmul.f32 %v286_v57, %v286_v57 }
 0x2e9   :  { %v287_v61 = vsub.f32 %v3097_v53, %v285_v59  ;;  %v290_v62 = vsel %vm226_vm1, %v288_v60, 0.0 }
 0x2ea   :  { %291 = vadd.xlane.f32.xlu0 %v290_v62 }
 0x2eb   :  { %v289_v63 = vmul.f32 %v287_v61, %v287_v61 }
 0x2ed   :  { %v293_v0 = vsel %vm226_vm1, %v289_v63, 0.0 }
 0x2ee   :  { %294 = vadd.xlane.f32.xlu1 %v293_v0 }
 0x377   :  { %v292_v4 = vpop.xlane.xlu0 %291 }
 0x378   :  { %v296_v5 = vmul.f32 0.03125, %v292_v4 }
 0x37a   :  { %v298_v6 = vadd.f32 1e-05, %v296_v5 }
 0x37b   :  { %v295_v7 = vpop.xlane.xlu1 %294 }
 0x37c   :  { %2783 = vrsqrt.f32 %v298_v6  ;;  %v297_v8 = vmul.f32 0.03125, %v295_v7 }
 0x37e   :  { %v299_v9 = vadd.f32 1e-05, %v297_v8 }
 0x380   :  { %2785 = vrsqrt.f32 %v299_v9 }
 0x386   :  { %v2784_v10 = vpop.eup %2783 }
 0x387   :  { %v302_v11 = vmul.f32 %v2784_v10, %v286_v57 }
 0x389   :  { %v310_v15 = vmul.f32 %v2312_v12, %v302_v11 }
 0x38a   :  { %v2786_v13 = vpop.eup %2785 }
 0x38b   :  { %v303_v14 = vmul.f32 %v2786_v13, %v287_v61  ;;  %v318_v18 = vadd.f32 %v2313_v16, %v310_v15 }
 0x38d   :  { %v311_v17 = vmul.f32 %v2312_v12, %v303_v14 }
 0x38f   :  { %v319_v19 = vadd.f32 %v2313_v16, %v311_v17 }
 0x391   :  { %v320_v20 = vpack.c.bf16 %v319_v19, %v318_v18 }
 0x393   :  { %2499 = vmatmul.mubr.msk.bf16.vlgmr.msra.gmra.mrb[0].mxu1 %vm226_vm1, %v320_v20 }
 0x394   :  { %2504 = vmatprep.mubr.msk.bf16.mxu1 %vm2907_vm2, %v2906_v2 }
 0x466   :  { %v381_v22 = vpop.f32.mrb[0].mxu1 }
 0x467   :  { %v2500_v23 = vpop.f32.mrb[1].mxu1  ;;  %v382_v25 = vadd.f32 %v2314_v21, %v381_v22 }
 0x468   :  { %v384_v24 = vpop.f32.mrb[2].mxu1 }
 0x469   :  { %v385_v26 = vadd.f32 %v2314_v21, %v384_v24  ;;  %v2501_v27 = vpop.f32.mrb[3].mxu1 }
 0x46b   :  { %v3131_v28 = vpack.c.bf16 %v385_v26, %v382_v25 }
 0x46d   :  { %390 = vrot.lane.b32.xlu0 %v3131_v28, %s2908_s1 }
 0x471   :  { %513 = vrot.lane.b32.xlu0 %v3131_v28, %s2909_s4 }
 0x475   :  { %511 = vrot.lane.b32.xlu0 %v3131_v28, %s2910_s30 }
 0x4df   :  { %v391_v29 = vpop.permute.xlu0 %390 }
 0x4e0   :  { %v397_v30 = vsel %vm392_vm3, %v391_v29, 0 }
 0x4e1   :  { %2503 = vmatpush3.bf16.xpose.msra.mxu1 %v397_v30 }
 0x4e2   :  { %2508 = vmatprep.subr.bf16.mxu1 %v2906_v2 }
 0x4e3   :  { %v514_v60 = vpop.permute.xlu0 %513 }
 0x4e4   :  { %v519_v62 = vsel %vm392_vm3, %v514_v60, 0 }
 0x4e7   :  { %v512_v63 = vpop.permute.xlu0 %511 }
 0x4e8   :  { %2505 = vmatmul.mubr.msk.bf16.vlgmr.msra.gmra.mrb[4].mxu1 %vm392_vm3, %v3131_v28 }
 0x4e9   :  { %2510 = vmatprep.mubr.msk.bf16.mxu1 %vm2907_vm2, %v2906_v2 }
 0x5bb   :  { %v433_v32 = vpop.f32.mrb[4].mxu1 }
 0x5bc   :  { %v434_v34 = vadd.f32 %v433_v32, %v3148_v31  ;;  %v2506_v35 = vpop.f32.mrb[5].mxu1 }
 0x5bd   :  { %v436_v36 = vpop.f32.mrb[6].mxu1 }
 0x5be   :  { %v437_v37 = vadd.f32 %v436_v36, %v3153_v33  ;;  %v2507_v38 = vpop.f32.mrb[7].mxu1  ;;  %v441_v39 = vsel %vm440_vm4, %v434_v34, -inf }
 0x5bf   :  { %442 = vmax.xlane.f32.xlu1 %v441_v39 }
 0x5c0   :  { %v444_v40 = vsel %vm440_vm4, %v437_v37, -inf }
 0x5c3   :  { %445 = vmax.xlane.f32.xlu1 %v444_v40 }
 0x64c   :  { %v443_v41 = vpop.xlane.xlu1 %442 }
 0x64d   :  { %v447_v42 = vsub.f32 %v434_v34, %v443_v41 }
 0x64f   :  { %v449_v43 = vmul.f32 1.442695, %v447_v42 }
 0x650   :  { %v446_v44 = vpop.xlane.xlu1 %445 }
 0x651   :  { %2787 = vpow2.f32 %v449_v43  ;;  %v448_v45 = vsub.f32 %v437_v37, %v446_v44 }
 0x653   :  { %v451_v46 = vmul.f32 1.442695, %v448_v45 }
 0x655   :  { %2789 = vpow2.f32 %v451_v46 }
 0x65b   :  { %v2788_v47 = vpop.eup %2787 }
 0x65c   :  { %v453_v48 = vsel %vm440_vm4, %v2788_v47, 0.0 }
 0x65d   :  { %454 = vadd.xlane.f32.xlu1 %v453_v48 }
 0x65f   :  { %v2790_v49 = vpop.eup %2789 }
 0x660   :  { %v456_v50 = vsel %vm440_vm4, %v2790_v49, 0.0 }
 0x661   :  { %457 = vadd.xlane.f32.xlu1 %v456_v50 }
 0x672   :  { %464 = vrot.lane.b32.xlu1 %v3131_v28, %s2911_s25 }
 0x6ea   :  { %v455_v52 = vpop.xlane.xlu1 %454 }
 0x6eb   :  { %2791 = vrcp.f32 %v455_v52 }
 0x6ee   :  { %v458_v54 = vpop.xlane.xlu1 %457 }
 0x6ef   :  { %2793 = vrcp.f32 %v458_v54 }
 0x6f2   :  { %v465_v55 = vpop.permute.xlu1 %464 }
 0x6f3   :  { %2509 = vmatpush3.bf16.msra.mxu1 %v465_v55 }
 0x6f4   :  { %2514 = vmatprep.subr.bf16.mxu1 %v2906_v2 }
 0x6f5   :  { %v2792_v56 = vpop.eup %2791 }
 0x6f6   :  { %v461_v58 = vmul.f32 %v2792_v56, %v2788_v47 }
 0x6f9   :  { %v2794_v57 = vpop.eup %2793 }
 0x6fa   :  { %v462_v59 = vmul.f32 %v2794_v57, %v2790_v49 }
 0x6fc   :  { %v463_v61 = vpack.c.bf16 %v462_v59, %v461_v58 }
 0x6fe   :  { %2511 = vmatmul.mubr.msk.bf16.vlgmr.msra.gmra.mrb[8].mxu1 %vm440_vm4, %v463_v61 }
 0x6ff   :  { %2515 = vmatpush3.bf16.xpose.msra.mxu1 %v519_v62  ;;  %2516 = vmatprep.mubr.msk.bf16.mxu1 %vm2907_vm2, %v2906_v2 }
 0x700   :  { %2520 = vmatprep.subr.bf16.mxu1 %v2906_v2 }
 0x706   :  { %2517 = vmatmul.mubr.msk.bf16.vlgmr.msra.gmra.mrb[12].mxu1 %vm392_vm3, %v512_v63 }
 0x707   :  { %2522 = vmatprep.mubr.msk.bf16.mxu1 %vm2907_vm2, %v2906_v2 }
 0x7d1   :  { %v3172_v0 = vpop.f32.mrb[8].mxu1 }
 0x7d2   :  { %v2512_v1 = vpop.f32.mrb[9].mxu1 }
 0x7d3   :  { %v3174_v3 = vpop.f32.mrb[10].mxu1 }
 0x7d4   :  { %v2513_v4 = vpop.f32.mrb[11].mxu1 }
 0x7d9   :  { %v555_v5 = vpop.f32.mrb[12].mxu1 }
 0x7da   :  { %v556_v6 = vadd.f32 %v555_v5, %v3148_v31  ;;  %v2518_v7 = vpop.f32.mrb[13].mxu1 }
 0x7db   :  { %v558_v8 = vpop.f32.mrb[14].mxu1 }
 0x7dc   :  { %v559_v9 = vadd.f32 %v558_v8, %v3153_v33  ;;  %v2519_v10 = vpop.f32.mrb[15].mxu1  ;;  %v562_v11 = vsel %vm440_vm4, %v556_v6, -inf }
 0x7dd   :  { %563 = vmax.xlane.f32.xlu0 %v562_v11 }
 0x7de   :  { %v565_v12 = vsel %vm440_vm4, %v559_v9, -inf }
 0x7df   :  { %566 = vmax.xlane.f32.xlu1 %v565_v12 }
 0x7f0   :  { %634 = vrot.lane.b32.xlu1 %v3131_v28, %s2912_s27 }
 0x7f4   :  { %632 = vrot.lane.b32.xlu1 %v3131_v28, %s2913_s3 }
 0x86a   :  { %v564_v13 = vpop.xlane.xlu0 %563 }
 0x86b   :  { %v568_v14 = vsub.f32 %v556_v6, %v564_v13 }
 0x86c   :  { %v567_v15 = vpop.xlane.xlu1 %566 }
 0x86d   :  { %v570_v16 = vmul.f32 1.442695, %v568_v14  ;;  %v569_v17 = vsub.f32 %v559_v9, %v567_v15 }
 0x86f   :  { %2795 = vpow2.f32 %v570_v16  ;;  %v572_v18 = vmul.f32 1.442695, %v569_v17 }
 0x870   :  { %v635_v32 = vpop.permute.xlu1 %634 }
 0x871   :  { %2797 = vpow2.f32 %v572_v18  ;;  %v640_v35 = vsel %vm392_vm3, %v635_v32, 0 }
 0x874   :  { %v633_v36 = vpop.permute.xlu1 %632 }
 0x879   :  { %v2796_v19 = vpop.eup %2795 }
 0x87a   :  { %v574_v20 = vsel %vm440_vm4, %v2796_v19, 0.0 }
 0x87b   :  { %v2798_v21 = vpop.eup %2797  ;;  %575 = vadd.xlane.f32.xlu0 %v574_v20 }
 0x87c   :  { %v577_v22 = vsel %vm440_vm4, %v2798_v21, 0.0 }
 0x87f   :  { %578 = vadd.xlane.f32.xlu0 %v577_v22 }
 0x895   :  { %585 = vrot.lane.b32.xlu0 %v3131_v28, %s3617_s28 }
 0x908   :  { %v576_v23 = vpop.xlane.xlu0 %575 }
 0x909   :  { %2799 = vrcp.f32 %v576_v23 }
 0x90c   :  { %v579_v24 = vpop.xlane.xlu0 %578 }
 0x90d   :  { %2801 = vrcp.f32 %v579_v24 }
 0x910   :  { %v586_v25 = vpop.permute.xlu0 %585 }
 0x911   :  { %2521 = vmatpush3.bf16.msra.mxu1 %v586_v25 }
 0x912   :  { %2526 = vmatprep.subr.bf16.mxu1 %v2906_v2 }
 0x913   :  { %v2800_v26 = vpop.eup %2799 }
 0x914   :  { %v582_v29 = vmul.f32 %v2800_v26, %v2796_v19 }
 0x917   :  { %v2802_v27 = vpop.eup %2801 }
 0x918   :  { %v583_v30 = vmul.f32 %v2802_v27, %v2798_v21 }
 0x91a   :  { %v584_v34 = vpack.c.bf16 %v583_v30, %v582_v29 }
 0x91c   :  { %2523 = vmatmul.mubr.msk.bf16.vlgmr.msra.gmra.mrb[16].mxu1 %vm440_vm4, %v584_v34 }
 0x91d   :  { %2527 = vmatpush3.bf16.xpose.msra.mxu1 %v640_v35  ;;  %2528 = vmatprep.mubr.msk.bf16.mxu1 %vm2907_vm2, %v2906_v2 }
 0x91e   :  { %2532 = vmatprep.subr.bf16.mxu1 %v2906_v2 }
 0x924   :  { %2529 = vmatmul.mubr.msk.bf16.vlgmr.msra.gmra.mrb[20].mxu1 %vm392_vm3, %v633_v36 }
 0x925   :  { %2534 = vmatprep.mubr.msk.bf16.mxu1 %vm2907_vm2, %v2906_v2 }
 0x9ef   :  { %v3197_v37 = vpop.f32.mrb[16].mxu1 }
 0x9f0   :  { %v2524_v38 = vpop.f32.mrb[17].mxu1 }
 0x9f1   :  { %v3199_v39 = vpop.f32.mrb[18].mxu1 }
 0x9f2   :  { %v2704_v40 = vpack.i.bf16 %v3199_v39, %v3197_v37  ;;  %v2525_v41 = vpop.f32.mrb[19].mxu1 }
 0x9f7   :  { %v676_v42 = vpop.f32.mrb[20].mxu1 }
 0x9f8   :  { %v677_v43 = vadd.f32 %v676_v42, %v3148_v31  ;;  %v2530_v44 = vpop.f32.mrb[21].mxu1 }
 0x9f9   :  { %v679_v45 = vpop.f32.mrb[22].mxu1 }
 0x9fa   :  { %v680_v46 = vadd.f32 %v679_v45, %v3153_v33  ;;  %v2531_v47 = vpop.f32.mrb[23].mxu1  ;;  %v683_v48 = vsel %vm440_vm4, %v677_v43, -inf }
 0x9fb   :  { %684 = vmax.xlane.f32.xlu1 %v683_v48 }
 0x9fc   :  { %v686_v49 = vsel %vm440_vm4, %v680_v46, -inf }
 0x9fd   :  { %687 = vmax.xlane.f32.xlu0 %v686_v49 }
 0xa0c   :  { %706 = vrot.lane.b32.xlu1 %v3131_v28, %s3618_s29 }
 0xa10   :  { %753 = vrot.lane.b32.xlu1 %v3131_v28, %s2916_s0 }
 0xa88   :  { %v685_v50 = vpop.xlane.xlu1 %684 }
 0xa89   :  { %v689_v52 = vsub.f32 %v677_v43, %v685_v50 }
 0xa8a   :  { %v688_v54 = vpop.xlane.xlu0 %687 }
 0xa8b   :  { %v691_v55 = vmul.f32 1.442695, %v689_v52  ;;  %v690_v56 = vsub.f32 %v680_v46, %v688_v54 }
 0xa8c   :  { %v707_v57 = vpop.permute.xlu1 %706 }
 0xa8d   :  { %2803 = vpow2.f32 %v691_v55  ;;  %v693_v58 = vmul.f32 1.442695, %v690_v56  ;;  %2533 = vmatpush3.bf16.msra.mxu1 %v707_v57 }
 0xa8e   :  { %2538 = vmatprep.subr.bf16.mxu1 %v2906_v2 }
 0xa8f   :  { %2805 = vpow2.f32 %v693_v58 }
 0xa90   :  { %v754_v11 = vpop.permute.xlu1 %753 }
 0xa97   :  { %v2804_v59 = vpop.eup %2803 }
 0xa98   :  { %v695_v60 = vsel %vm440_vm4, %v2804_v59, 0.0 }
 0xa99   :  { %v2806_v61 = vpop.eup %2805  ;;  %696 = vadd.xlane.f32.xlu0 %v695_v60 }
 0xa9a   :  { %v698_v62 = vsel %vm440_vm4, %v2806_v61, 0.0 }
 0xa9d   :  { %699 = vadd.xlane.f32.xlu0 %v698_v62 }
 0xab3   :  { %755 = vrot.lane.b32.xlu0 %v3131_v28, %s2917_s26 }
 0xb26   :  { %v697_v63 = vpop.xlane.xlu0 %696 }
 0xb27   :  { %2807 = vrcp.f32 %v697_v63 }
 0xb2a   :  { %v700_v1 = vpop.xlane.xlu0 %699 }
 0xb2b   :  { %2809 = vrcp.f32 %v700_v1 }
 0xb2e   :  { %v756_v8 = vpop.permute.xlu0 %755 }
 0xb2f   :  { %v761_v10 = vsel %vm392_vm3, %v756_v8, 0 }
 0xb31   :  { %v2808_v4 = vpop.eup %2807 }
 0xb32   :  { %v703_v6 = vmul.f32 %v2808_v4, %v2804_v59 }
 0xb35   :  { %v2810_v5 = vpop.eup %2809 }
 0xb36   :  { %v704_v7 = vmul.f32 %v2810_v5, %v2806_v61 }
 0xb38   :  { %v705_v9 = vpack.c.bf16 %v704_v7, %v703_v6 }
 0xb3a   :  { %2535 = vmatmul.mubr.msk.bf16.vlgmr.msra.gmra.mrb[24].mxu1 %vm440_vm4, %v705_v9 }
 0xb3b   :  { %2539 = vmatpush3.bf16.xpose.msra.mxu1 %v761_v10  ;;  %2540 = vmatprep.mubr.msk.bf16.mxu1 %vm2907_vm2, %v2906_v2 }
 0xb3c   :  { %2550 = vmatprep.subr.bf16.mxu1 %v2906_v2 }
 0xb42   :  { %2541 = vmatmul.mubr.msk.bf16.vlgmr.msra.gmra.mrb[28].mxu1 %vm392_vm3, %v754_v11 }
 0xb43   :  { %2554 = vmatprep.mubr.msk.bf16.mxu1 %vm2907_vm2, %v2906_v2 }
 0xc0d   :  { %v746_v12 = vpop.f32.mrb[24].mxu1 }
 0xc0e   :  { %v2536_v13 = vpop.f32.mrb[25].mxu1 }
 0xc0f   :  { %v749_v14 = vpop.f32.mrb[26].mxu1 }
 0xc10   :  { %v2709_v15 = vpack.i.bf16 %v749_v14, %v746_v12  ;;  %v2537_v16 = vpop.f32.mrb[27].mxu1 }
 0xc15   :  { %v797_v17 = vpop.f32.mrb[28].mxu1 }
 0xc16   :  { %v798_v18 = vadd.f32 %v797_v17, %v3148_v31  ;;  %v2542_v19 = vpop.f32.mrb[29].mxu1 }
 0xc17   :  { %v800_v20 = vpop.f32.mrb[30].mxu1 }
 0xc18   :  { %v801_v21 = vadd.f32 %v800_v20, %v3153_v33  ;;  %v2543_v22 = vpop.f32.mrb[31].mxu1  ;;  %v804_v23 = vsel %vm440_vm4, %v798_v18, -inf }
 0xc19   :  { %805 = vmax.xlane.f32.xlu1 %v804_v23 }
 0xc1a   :  { %v807_v24 = vsel %vm440_vm4, %v801_v21, -inf }
 0xc1b   :  { %808 = vmax.xlane.f32.xlu0 %v807_v24 }
 0xca6   :  { %v806_v25 = vpop.xlane.xlu1 %805 }
 0xca7   :  { %v810_v26 = vsub.f32 %v798_v18, %v806_v25 }
 0xca8   :  { %v809_v27 = vpop.xlane.xlu0 %808 }
 0xca9   :  { %v812_v29 = vmul.f32 1.442695, %v810_v26  ;;  %v811_v30 = vsub.f32 %v801_v21, %v809_v27 }
 0xcab   :  { %2811 = vpow2.f32 %v812_v29  ;;  %v814_v32 = vmul.f32 1.442695, %v811_v30  ;;  %v2753_v29 = vld [vmem:[%s3601_s14] sm:$0xff]   ;;  %v2754_v30 = vld [vmem:[%s3601_s14 + $0x8] sm:$0xff]  }
 0xcad   :  { %2813 = vpow2.f32 %v814_v32 }
 0xcb5   :  { %v2812_v34 = vpop.eup %2811 }
 0xcb6   :  { %v816_v35 = vsel %vm440_vm4, %v2812_v34, 0.0 }
 0xcb7   :  { %v2814_v36 = vpop.eup %2813  ;;  %817 = vadd.xlane.f32.xlu0 %v816_v35 }
 0xcb8   :  { %v819_v38 = vsel %vm440_vm4, %v2814_v36, 0.0 }
 0xcb9   :  { %820 = vadd.xlane.f32.xlu1 %v819_v38 }
 0xcca   :  { %2705 = vrot.lane.b32.xlu1 %v2704_v40, %s3614_s5  ;;  %v2752_v40 = vld [vmem:[%s3597_s10 + $0x8] sm:$0xff]  }
 0xccd   :  { %827 = vrot.lane.b32.xlu0 %v3131_v28, %s3615_s22  ;;  %v2751_v28 = vld [vmem:[%s3597_s10] sm:$0xff]   ;;  %s3616_s22 = smov 24  }
 0xcce   :  { %2710 = vrot.lane.b32.xlu1 %v2709_v15, %s3613_s23  ;;  %2551 = vmatpush3.bf16.msra.mxu1 %v2751_v28 }
 0xccf   :  { %2552 = vmatprep.subr.bf16.mxu1 %v2906_v2 }
 0xcd2   :  { %2553 = vmatpush3.bf16.msra.mxu1 %v2752_v40 }
 0xcd3   :  { %2566 = vmatprep.subr.bf16.mxu1 %v2906_v2 }
 0xd44   :  { %v818_v41 = vpop.xlane.xlu0 %817 }
 0xd45   :  { %2815 = vrcp.f32 %v818_v41 }
 0xd46   :  { %v821_v42 = vpop.xlane.xlu1 %820 }
 0xd47   :  { %2817 = vrcp.f32 %v821_v42 }
 0xd48   :  { %v828_v43 = vpop.permute.xlu0 %827 }
 0xd49   :  { %2545 = vmatpush3.bf16.msra.mxu0 %v828_v43 }
 0xd4a   :  { %2558 = vmatprep.subr.bf16.mxu0 %v2906_v2  ;;  %v2706_v54 = vpop.permute.xlu1 %2705 }
 0xd4b   :  { %v2708_v56 = vunpack.i.h.bf16 %v2706_v54  ;;  %v2707_v57 = vunpack.i.l.bf16 %v2706_v54  ;;  %v2758_v54 = vld [vmem:[%s3603_s16 + $0x18] sm:$0xff]  }
 0xd4d   :  { %v899_v61 = vsel %vm392_vm3, %v3174_v3, %v2708_v56  ;;  %v898_v62 = vsel %vm392_vm3, %v3172_v0, %v2707_v57  ;;  %v2326_v0 = vld [vmem:[%s3598_s11] ss:$0 sm:$0xff]  ;;  %v2760_v56 = vld [vmem:[%s3603_s16 + $0x28] sm:$0xff]   ;;  %v2761_v57 = vld [vmem:[%s3603_s16 + $0x30] sm:$0xff]  }
 0xd4e   :  { %v2711_v55 = vpop.permute.xlu1 %2710 }
 0xd4f   :  { %v2816_v44 = vpop.eup %2815  ;;  %v2713_v58 = vunpack.i.h.bf16 %v2711_v55  ;;  %v2712_v59 = vunpack.i.l.bf16 %v2711_v55  ;;  %v2759_v55 = vld [vmem:[%s3603_s16 + $0x20] sm:$0xff]  }
 0xd50   :  { %v824_v46 = vmul.f32 %v2816_v44, %v2812_v34  ;;  %v2330_v44 = vld [vmem:[%s3599_s12] ss:$0 sm:$0xff] }
 0xd51   :  { %v2818_v45 = vpop.eup %2817  ;;  %v900_v4 = vsel %vm440_vm4, %v898_v62, %v2712_v59  ;;  %v901_v5 = vsel %vm440_vm4, %v899_v61, %v2713_v58  ;;  %v2762_v58 = vld [vmem:[%s3603_s16 + $0x38] sm:$0xff]   ;;  %v2332_v59 = vld [vmem:[%s3602_s15] ss:$0 sm:$0xff] }
 0xd52   :  { %v825_v37 = vmul.f32 %v2818_v45, %v2814_v36 }
 0xd54   :  { %v826_v39 = vpack.c.bf16 %v825_v37, %v824_v46 }
 0xd56   :  { %2547 = vmatmul.mubr.msk.bf16.vlgmr.msra.gmra.mrb[4].mxu0 %vm440_vm4, %v826_v39  ;;  %v2331_v39 = vld [vmem:[%s3600_s13] ss:$0 sm:$0xff] }
 0xd57   :  { %2562 = vmatprep.mubr.msk.bf16.mxu0 %vm2907_vm2, %v2906_v2  ;;  %2559 = vmatpush3.bf16.msra.mxu0 %v2753_v29 }
 0xd58   :  { %2560 = vmatprep.subr.bf16.mxu0 %v2906_v2 }
 0xd5b   :  { %2561 = vmatpush3.bf16.msra.mxu0 %v2754_v30 }
 0xd5c   :  { %2586 = vmatprep.subr.bf16.mxu0 %v2906_v2 }
 0xe29   :  { %v867_v47 = vpop.f32.mrb[4].mxu0 }
 0xe2a   :  { %v2548_v48 = vpop.f32.mrb[5].mxu0 }
 0xe2b   :  { %v870_v49 = vpop.f32.mrb[6].mxu0 }
 0xe2c   :  { %v2714_v50 = vpack.i.bf16 %v870_v49, %v867_v47  ;;  %v2549_v52 = vpop.f32.mrb[7].mxu0  ;;  %v2755_v49 = vld [vmem:[%s3603_s16] sm:$0xff]  }
 0xe2d   :  { %v2757_v52 = vld [vmem:[%s3603_s16 + $0x10] sm:$0xff]  }
 0xe2e   :  { %2715 = vrot.lane.b32.xlu1 %v2714_v50, %s3616_s22  ;;  %v2756_v50 = vld [vmem:[%s3603_s16 + $0x8] sm:$0xff]  }
 0xea0   :  { %v2716_v60 = vpop.permute.xlu1 %2715 }
 0xea1   :  { %v2718_v63 = vunpack.i.h.bf16 %v2716_v60  ;;  %v2717_v1 = vunpack.i.l.bf16 %v2716_v60 }
 0xea3   :  { %v904_v6 = vsel %vm902_vm5, %v901_v5, %v2718_v63  ;;  %v903_v7 = vsel %vm902_vm5, %v900_v4, %v2717_v1 }
 0xea4   :  { %v905_v8 = vpack.c.bf16 %v904_v6, %v903_v7 }
 0xea6   :  { %2555 = vmatmul.mubr.msk.bf16.vlgmr.msra.gmra.mrb[32].mxu1 %vm226_vm1, %v905_v8 }
 0xea7   :  { %2582 = vmatprep.mubr.msk.bf16.mxu1 %vm2907_vm2, %v2906_v2  ;;  %2567 = vmatpush3.bf16.msra.mxu1 %v2755_v49 }
 0xea8   :  { %2568 = vmatprep.subr.bf16.mxu1 %v2906_v2 }
 0xeab   :  { %2569 = vmatpush3.bf16.msra.mxu1 %v2756_v50 }
 0xeac   :  { %2570 = vmatprep.subr.bf16.mxu1 %v2906_v2 }
 0xeaf   :  { %2571 = vmatpush3.bf16.msra.mxu1 %v2757_v52 }
 0xeb0   :  { %2572 = vmatprep.subr.bf16.mxu1 %v2906_v2 }
 0xeb3   :  { %2573 = vmatpush3.bf16.msra.mxu1 %v2758_v54 }
 0xeb4   :  { %2574 = vmatprep.subr.bf16.mxu1 %v2906_v2 }
 0xeb7   :  { %2575 = vmatpush3.bf16.msra.mxu1 %v2759_v55  ;;  %v2350_v55 = vld [vmem:[%s3594_s7 + $0x1] ss:$0 sm:$0xff]  ;;  %s3632_s7 = smov 56  }
 0xeb8   :  { %2576 = vmatprep.subr.bf16.mxu1 %v2906_v2 }
 0xebb   :  { %2577 = vmatpush3.bf16.msra.mxu1 %v2760_v56 }
 0xebc   :  { %2578 = vmatprep.subr.bf16.mxu1 %v2906_v2 }
 0xebf   :  { %2579 = vmatpush3.bf16.msra.mxu1 %v2761_v57 }
 0xec0   :  { %2580 = vmatprep.subr.bf16.mxu1 %v2906_v2 }
 0xec3   :  { %2581 = vmatpush3.bf16.msra.mxu1 %v2762_v58 }
 0xec4   :  { %2612 = vmatprep.subr.bf16.mxu1 %v2906_v2 }
 0xf79   :  { %v966_v3 = vpop.f32.mrb[32].mxu1 }
 0xf7a   :  { %v967_v9 = vadd.f32 %v2326_v0, %v966_v3  ;;  %v2556_v10 = vpop.f32.mrb[33].mxu1 }
 0xf7b   :  { %v969_v11 = vpop.f32.mrb[34].mxu1 }
 0xf7c   :  { %v973_v12 = vadd.f32 %v967_v9, %v3093_v51  ;;  %v970_v13 = vadd.f32 %v2326_v0, %v969_v11  ;;  %v2557_v14 = vpop.f32.mrb[35].mxu1 }
 0xf7e   :  { %975 = vst.msk [vmem:[#allocation2] sm:$0xff] %vm226_vm1, %v973_v12  ;;  %v974_v15 = vadd.f32 %v970_v13, %v3097_v53 }
 0xf80   :  { %976 = vst.msk [vmem:[#allocation2 + $0x8] sm:$0xff] %vm226_vm1, %v974_v15 }
 0xf85   :  { %v3268_v16 = vld [vmem:[#allocation2] sm:$0xff] }
 0xf86   :  { %v981_v17 = vsel %vm226_vm1, %v3268_v16, 0.0 }
 0xf87   :  { %982 = vadd.xlane.f32.xlu0 %v981_v17  ;;  %v3272_v18 = vld [vmem:[#allocation2 + $0x8] sm:$0xff]  ;;  %v2338_v17 = vld [vmem:[%s3604_s17] ss:$0 sm:$0xff] }
 0xf88   :  { %v984_v19 = vsel %vm226_vm1, %v3272_v18, 0.0 }
 0xf89   :  { %985 = vadd.xlane.f32.xlu1 %v984_v19 }
0x1014   :  { %v983_v51 = vpop.xlane.xlu0 %982 }
0x1015   :  { %v987_v20 = vmul.f32 0.03125, %v983_v51 }
0x1016   :  { %v986_v21 = vpop.xlane.xlu1 %985 }
0x1017   :  { %v989_v22 = vsub.f32 %v3268_v16, %v987_v20  ;;  %v988_v53 = vmul.f32 0.03125, %v986_v21 }
0x1019   :  { %v990_v23 = vsub.f32 %v3272_v18, %v988_v53  ;;  %v991_v24 = vmul.f32 %v989_v22, %v989_v22 }
0x101b   :  { %v993_v25 = vsel %vm226_vm1, %v991_v24, 0.0  ;;  %v992_v26 = vmul.f32 %v990_v23, %v990_v23 }
0x101c   :  { %994 = vadd.xlane.f32.xlu0 %v993_v25 }
0x101d   :  { %v996_v27 = vsel %vm226_vm1, %v992_v26, 0.0 }
0x1020   :  { %997 = vadd.xlane.f32.xlu0 %v996_v27 }
0x10a9   :  { %v995_v32 = vpop.xlane.xlu0 %994 }
0x10aa   :  { %v999_v34 = vmul.f32 0.03125, %v995_v32 }
0x10ac   :  { %v1001_v35 = vadd.f32 1e-05, %v999_v34 }
0x10ad   :  { %v998_v36 = vpop.xlane.xlu0 %997 }
0x10ae   :  { %2819 = vrsqrt.f32 %v1001_v35  ;;  %v1000_v38 = vmul.f32 0.03125, %v998_v36 }
0x10b0   :  { %v1002_v41 = vadd.f32 1e-05, %v1000_v38 }
0x10b2   :  { %2821 = vrsqrt.f32 %v1002_v41 }
0x10b8   :  { %v2820_v42 = vpop.eup %2819 }
0x10b9   :  { %v1005_v43 = vmul.f32 %v2820_v42, %v989_v22 }
0x10bb   :  { %v1013_v46 = vmul.f32 %v2330_v44, %v1005_v43  ;;  %v2763_v43 = vld [vmem:[%s3595_s8 + $0x10] sm:$0xff]  }
0x10bc   :  { %v2822_v45 = vpop.eup %2821 }
0x10bd   :  { %v1006_v37 = vmul.f32 %v2822_v45, %v990_v23  ;;  %v1021_v40 = vadd.f32 %v2331_v39, %v1013_v46 }
0x10bf   :  { %v1014_v28 = vmul.f32 %v2330_v44, %v1006_v37  ;;  %v2764_v44 = vld [vmem:[%s3595_s8 + $0x18] sm:$0xff]  }
0x10c1   :  { %v1022_v47 = vadd.f32 %v2331_v39, %v1014_v28 }
0x10c3   :  { %v1023_v48 = vpack.c.bf16 %v1022_v47, %v1021_v40 }
0x10c5   :  { %2563 = vmatmul.mubr.msk.bf16.vlgmr.msra.gmra.mrb[8].mxu0 %vm226_vm1, %v1023_v48  ;;  %v2349_v48 = vld [vmem:[%s3593_s6 + $0x1] ss:$0 sm:$0xff]  ;;  %s3631_s6 = smov 48  }
0x10c6   :  { %2590 = vmatprep.mubr.msk.bf16.mxu0 %vm2907_vm2, %v2906_v2  ;;  %2587 = vmatpush3.bf16.msra.mxu0 %v2763_v43 }
0x10c7   :  { %2588 = vmatprep.subr.bf16.mxu0 %v2906_v2 }
0x10ca   :  { %2589 = vmatpush3.bf16.msra.mxu0 %v2764_v44 }
0x10cb   :  { %2594 = vmatprep.subr.bf16.mxu0 %v2906_v2 }
0x1198   :  { %v1084_v60 = vpop.f32.mrb[8].mxu0 }
0x1199   :  { %v1085_v61 = vadd.f32 %v2332_v59, %v1084_v60  ;;  %v2564_v62 = vpop.f32.mrb[9].mxu0  ;;  %v2356_v60 = vld [vmem:[%s3596_s9 + $0x1] ss:$0 sm:$0xff]  ;;  %s3633_s9 = smov 40  }
0x119a   :  { %v1087_v63 = vpop.f32.mrb[10].mxu0 }
0x119b   :  { %v2336_v1 = vmul.f32 -1.702, %v1085_v61  ;;  %v1088_v4 = vadd.f32 %v2332_v59, %v1087_v63  ;;  %v2565_v5 = vpop.f32.mrb[11].mxu0 }
0x119d   :  { %v1095_v6 = vmul.f32 1.442695, %v2336_v1  ;;  %v2337_v7 = vmul.f32 -1.702, %v1088_v4 }
0x119f   :  { %2823 = vpow2.f32 %v1095_v6  ;;  %v1097_v8 = vmul.f32 1.442695, %v2337_v7 }
0x11a1   :  { %2825 = vpow2.f32 %v1097_v8 }
0x11a9   :  { %v2824_v0 = vpop.eup %2823 }
0x11aa   :  { %v1099_v3 = vadd.f32 1.0, %v2824_v0 }
0x11ab   :  { %v2826_v9 = vpop.eup %2825 }
0x11ac   :  { %2827 = vrcp.f32 %v1099_v3  ;;  %v1100_v10 = vadd.f32 1.0, %v2826_v9 }
0x11ae   :  { %2829 = vrcp.f32 %v1100_v10 }
0x11b6   :  { %v2828_v11 = vpop.eup %2827 }
0x11b7   :  { %v1105_v13 = vmul.f32 %v2828_v11, %v1085_v61 }
0x11b8   :  { %v2830_v12 = vpop.eup %2829 }
0x11b9   :  { %v1106_v14 = vmul.f32 %v2830_v12, %v1088_v4 }
0x11bb   :  { %v1107_v15 = vpack.c.bf16 %v1106_v14, %v1105_v13 }
0x11bd   :  { %2583 = vmatmul.mubr.bf16.vlgmr.msra.gmra.mrb[36].mxu1 %v1107_v15 }
0x11be   :  { %2614 = vmatprep.mubr.msk.bf16.mxu1 %vm2907_vm2, %v2906_v2 }
0x1290   :  { %v1213_v19 = vpop.f32.mrb[36].mxu1 }
0x1291   :  { %v1214_v51 = vadd.f32 %v2338_v17, %v1213_v19  ;;  %v2584_v20 = vpop.f32.mrb[37].mxu1 }
0x1292   :  { %v1216_v21 = vpop.f32.mrb[38].mxu1 }
0x1293   :  { %v1220_v22 = vadd.f32 %v1214_v51, %v3268_v16  ;;  %v1217_v53 = vadd.f32 %v2338_v17, %v1216_v21  ;;  %v2585_v23 = vpop.f32.mrb[39].mxu1 }
0x1295   :  { %1222 = vst.msk [vmem:[#allocation2] sm:$0xff] %vm226_vm1, %v1220_v22  ;;  %v1221_v24 = vadd.f32 %v1217_v53, %v3272_v18 }
0x1297   :  { %1223 = vst.msk [vmem:[#allocation2 + $0x8] sm:$0xff] %vm226_vm1, %v1221_v24 }
0x129c   :  { %v3341_v25 = vld [vmem:[#allocation2] sm:$0xff] }
0x129d   :  { %v1230_v26 = vsel %vm226_vm1, %v3341_v25, 0.0 }
0x129e   :  { %1231 = vadd.xlane.f32.xlu0 %v1230_v26  ;;  %v3345_v27 = vld [vmem:[#allocation2 + $0x8] sm:$0xff] }
0x129f   :  { %v1233_v29 = vsel %vm226_vm1, %v3345_v27, 0.0 }
0x12a0   :  { %1234 = vadd.xlane.f32.xlu1 %v1233_v29 }
0x132b   :  { %v1232_v16 = vpop.xlane.xlu0 %1231 }
0x132c   :  { %v1236_v30 = vmul.f32 0.03125, %v1232_v16 }
0x132d   :  { %v1235_v32 = vpop.xlane.xlu1 %1234 }
0x132e   :  { %v1238_v34 = vsub.f32 %v3341_v25, %v1236_v30  ;;  %v1237_v18 = vmul.f32 0.03125, %v1235_v32 }
0x1330   :  { %v1239_v35 = vsub.f32 %v3345_v27, %v1237_v18  ;;  %v1240_v36 = vmul.f32 %v1238_v34, %v1238_v34 }
0x1332   :  { %v1242_v38 = vsel %vm226_vm1, %v1240_v36, 0.0  ;;  %v1241_v41 = vmul.f32 %v1239_v35, %v1239_v35 }
0x1333   :  { %1243 = vadd.xlane.f32.xlu0 %v1242_v38 }
0x1334   :  { %v1245_v42 = vsel %vm226_vm1, %v1241_v41, 0.0 }
0x1335   :  { %1246 = vadd.xlane.f32.xlu1 %v1245_v42 }
0x13c0   :  { %v1244_v45 = vpop.xlane.xlu0 %1243 }
0x13c1   :  { %v1248_v46 = vmul.f32 0.03125, %v1244_v45 }
0x13c2   :  { %v1247_v37 = vpop.xlane.xlu1 %1246 }
0x13c3   :  { %v1250_v39 = vadd.f32 1e-05, %v1248_v46  ;;  %v1249_v28 = vmul.f32 0.03125, %v1247_v37 }
0x13c5   :  { %2831 = vrsqrt.f32 %v1250_v39  ;;  %v1251_v40 = vadd.f32 1e-05, %v1249_v28 }
0x13c7   :  { %2833 = vrsqrt.f32 %v1251_v40 }
0x13cf   :  { %v2832_v47 = vpop.eup %2831 }
0x13d0   :  { %v1254_v49 = vmul.f32 %v2832_v47, %v1238_v34 }
0x13d1   :  { %v2834_v50 = vpop.eup %2833 }
0x13d2   :  { %v1262_v52 = vmul.f32 %v2349_v48, %v1254_v49  ;;  %v1255_v54 = vmul.f32 %v2834_v50, %v1239_v35 }
0x13d4   :  { %v1263_v56 = vmul.f32 %v2349_v48, %v1255_v54  ;;  %v1270_v57 = vadd.f32 %v2350_v55, %v1262_v52 }
0x13d6   :  { %v1271_v58 = vadd.f32 %v2350_v55, %v1263_v56 }
0x13d8   :  { %v1272_v59 = vpack.c.bf16 %v1271_v58, %v1270_v57 }
0x13da   :  { %2591 = vmatmul.mubr.msk.bf16.vlgmr.msra.gmra.mrb[12].mxu0 %vm226_vm1, %v1272_v59 }
0x13db   :  { %2596 = vmatprep.mubr.msk.bf16.mxu0 %vm2907_vm2, %v2906_v2 }
0x14ad   :  { %v1335_v61 = vpop.f32.mrb[12].mxu0 }
0x14ae   :  { %v2592_v62 = vpop.f32.mrb[13].mxu0  ;;  %v1336_v1 = vadd.f32 %v2356_v60, %v1335_v61 }
0x14af   :  { %v1338_v63 = vpop.f32.mrb[14].mxu0 }
0x14b0   :  { %v1339_v4 = vadd.f32 %v2356_v60, %v1338_v63  ;;  %v2593_v5 = vpop.f32.mrb[15].mxu0 }
0x14b2   :  { %v3373_v6 = vpack.c.bf16 %v1339_v4, %v1336_v1 }
0x14b4   :  { %1344 = vrot.lane.b32.xlu0 %v3373_v6, %s2908_s1 }
0x14b8   :  { %1465 = vrot.lane.b32.xlu0 %v3373_v6, %s2909_s4 }
0x14bc   :  { %1463 = vrot.lane.b32.xlu0 %v3373_v6, %s2910_s30  ;;  %s3634_s30 = smov 8  }
0x14c0   :  { %1586 = vrot.lane.b32.xlu0 %v3373_v6, %s2912_s27 }
0x14c4   :  { %1707 = vrot.lane.b32.xlu0 %v3373_v6, %s2917_s26 }
0x1526   :  { %v1345_v7 = vpop.permute.xlu0 %1344 }
0x1527   :  { %v1350_v8 = vsel %vm392_vm3, %v1345_v7, 0 }
0x1528   :  { %2595 = vmatpush3.bf16.xpose.msra.mxu0 %v1350_v8 }
0x1529   :  { %2600 = vmatprep.subr.bf16.mxu0 %v2906_v2 }
0x152a   :  { %v1466_v32 = vpop.permute.xlu0 %1465 }
0x152b   :  { %v1471_v41 = vsel %vm392_vm3, %v1466_v32, 0 }
0x152e   :  { %v1464_v38 = vpop.permute.xlu0 %1463 }
0x152f   :  { %2597 = vmatmul.mubr.msk.bf16.vlgmr.msra.gmra.mrb[16].mxu0 %vm392_vm3, %v3373_v6 }
0x1530   :  { %2602 = vmatprep.mubr.msk.bf16.mxu0 %vm2907_vm2, %v2906_v2 }
0x1532   :  { %v1587_v42 = vpop.permute.xlu0 %1586 }
0x1533   :  { %v1592_v43 = vsel %vm392_vm3, %v1587_v42, 0 }
0x1536   :  { %v1708_v44 = vpop.permute.xlu0 %1707 }
0x1537   :  { %v1713_v46 = vsel %vm392_vm3, %v1708_v44, 0 }
0x1602   :  { %v1386_v0 = vpop.f32.mrb[16].mxu0 }
0x1603   :  { %v1387_v3 = vadd.f32 %v1386_v0, %v3148_v31  ;;  %v2598_v9 = vpop.f32.mrb[17].mxu0 }
0x1604   :  { %v1389_v10 = vpop.f32.mrb[18].mxu0 }
0x1605   :  { %v1390_v11 = vadd.f32 %v1389_v10, %v3153_v33  ;;  %v2599_v12 = vpop.f32.mrb[19].mxu0  ;;  %v1393_v13 = vsel %vm440_vm4, %v1387_v3, -inf }
0x1606   :  { %1394 = vmax.xlane.f32.xlu1 %v1393_v13 }
0x1607   :  { %v1396_v14 = vsel %vm440_vm4, %v1390_v11, -inf }
0x160a   :  { %1397 = vmax.xlane.f32.xlu1 %v1396_v14 }
0x1693   :  { %v1395_v15 = vpop.xlane.xlu1 %1394 }
0x1694   :  { %v1399_v17 = vsub.f32 %v1387_v3, %v1395_v15 }
0x1696   :  { %v1401_v19 = vmul.f32 1.442695, %v1399_v17 }
0x1697   :  { %v1398_v51 = vpop.xlane.xlu1 %1397 }
0x1698   :  { %2835 = vpow2.f32 %v1401_v19  ;;  %v1400_v20 = vsub.f32 %v1390_v11, %v1398_v51 }
0x169a   :  { %v1403_v21 = vmul.f32 1.442695, %v1400_v20 }
0x169c   :  { %2837 = vpow2.f32 %v1403_v21 }
0x16a2   :  { %v2836_v22 = vpop.eup %2835 }
0x16a3   :  { %v1405_v53 = vsel %vm440_vm4, %v2836_v22, 0.0 }
0x16a4   :  { %1406 = vadd.xlane.f32.xlu1 %v1405_v53 }
0x16a6   :  { %v2838_v23 = vpop.eup %2837 }
0x16a7   :  { %v1408_v24 = vsel %vm440_vm4, %v2838_v23, 0.0 }
0x16a8   :  { %1409 = vadd.xlane.f32.xlu1 %v1408_v24 }
0x16b9   :  { %1416 = vrot.lane.b32.xlu1 %v3373_v6, %s2911_s25  ;;  %s3635_s25 = smov 16  }
0x16bd   :  { %1584 = vrot.lane.b32.xlu1 %v3373_v6, %s2913_s3 }
0x16c1   :  { %1705 = vrot.lane.b32.xlu1 %v3373_v6, %s2916_s0  ;;  %s3636_s0 = smov 24  }
0x1731   :  { %v1407_v26 = vpop.xlane.xlu1 %1406 }
0x1732   :  { %2839 = vrcp.f32 %v1407_v26 }
0x1735   :  { %v1410_v29 = vpop.xlane.xlu1 %1409 }
0x1736   :  { %2841 = vrcp.f32 %v1410_v29 }
0x1739   :  { %v1417_v16 = vpop.permute.xlu1 %1416 }
0x173a   :  { %2601 = vmatpush3.bf16.msra.mxu0 %v1417_v16 }
0x173b   :  { %2606 = vmatprep.subr.bf16.mxu0 %v2906_v2 }
0x173c   :  { %v2840_v30 = vpop.eup %2839 }
0x173d   :  { %v1413_v18 = vmul.f32 %v2840_v30, %v2836_v22  ;;  %v1585_v45 = vpop.permute.xlu1 %1584 }
0x1740   :  { %v2842_v34 = vpop.eup %2841 }
0x1741   :  { %v1414_v35 = vmul.f32 %v2842_v34, %v2838_v23  ;;  %v1706_v37 = vpop.permute.xlu1 %1705 }
0x1743   :  { %v1415_v36 = vpack.c.bf16 %v1414_v35, %v1413_v18 }
0x1745   :  { %2603 = vmatmul.mubr.msk.bf16.vlgmr.msra.gmra.mrb[20].mxu0 %vm440_vm4, %v1415_v36 }
0x1746   :  { %2607 = vmatpush3.bf16.xpose.msra.mxu0 %v1471_v41  ;;  %2608 = vmatprep.mubr.msk.bf16.mxu0 %vm2907_vm2, %v2906_v2 }
0x1747   :  { %2618 = vmatprep.subr.bf16.mxu0 %v2906_v2 }
0x174d   :  { %2609 = vmatmul.mubr.msk.bf16.vlgmr.msra.gmra.mrb[24].mxu0 %vm392_vm3, %v1464_v38 }
0x174e   :  { %2619 = vmatpush3.bf16.xpose.msra.mxu0 %v1592_v43  ;;  %2620 = vmatprep.mubr.msk.bf16.mxu0 %vm2907_vm2, %v2906_v2 }
0x174f   :  { %2630 = vmatprep.subr.bf16.mxu0 %v2906_v2 }
0x1755   :  { %2621 = vmatmul.mubr.msk.bf16.vlgmr.msra.gmra.mrb[28].mxu0 %vm392_vm3, %v1585_v45 }
0x1756   :  { %2631 = vmatpush3.bf16.xpose.msra.mxu0 %v1713_v46  ;;  %2632 = vmatprep.mubr.msk.bf16.mxu0 %vm2907_vm2, %v2906_v2 }
0x1757   :  { %2642 = vmatprep.subr.bf16.mxu0 %v2906_v2 }
0x175d   :  { %2633 = vmatmul.mubr.msk.bf16.vlgmr.msra.gmra.mrb[32].mxu0 %vm392_vm3, %v1706_v37 }
0x175e   :  { %2646 = vmatprep.mubr.msk.bf16.mxu0 %vm2907_vm2, %v2906_v2 }
0x1818   :  { %v3422_v39 = vpop.f32.mrb[20].mxu0 }
0x1819   :  { %v2604_v28 = vpop.f32.mrb[21].mxu0 }
0x181a   :  { %v3424_v40 = vpop.f32.mrb[22].mxu0 }
0x181b   :  { %v2605_v47 = vpop.f32.mrb[23].mxu0 }
0x1820   :  { %v1507_v48 = vpop.f32.mrb[24].mxu0 }
0x1821   :  { %v1508_v49 = vadd.f32 %v1507_v48, %v3148_v31  ;;  %v2610_v50 = vpop.f32.mrb[25].mxu0 }
0x1822   :  { %v1510_v52 = vpop.f32.mrb[26].mxu0 }
0x1823   :  { %v1511_v54 = vadd.f32 %v1510_v52, %v3153_v33  ;;  %v2611_v55 = vpop.f32.mrb[27].mxu0  ;;  %v1514_v56 = vsel %vm440_vm4, %v1508_v49, -inf }
0x1824   :  { %1515 = vmax.xlane.f32.xlu0 %v1514_v56 }
0x1825   :  { %v1517_v57 = vsel %vm440_vm4, %v1511_v54, -inf }
0x1826   :  { %1518 = vmax.xlane.f32.xlu1 %v1517_v57 }
0x1828   :  { %v1628_v58 = vpop.f32.mrb[28].mxu0 }
0x1829   :  { %v1629_v59 = vadd.f32 %v1628_v58, %v3148_v31  ;;  %v2622_v60 = vpop.f32.mrb[29].mxu0 }
0x182a   :  { %v1631_v61 = vpop.f32.mrb[30].mxu0 }
0x182b   :  { %v1632_v62 = vadd.f32 %v1631_v61, %v3153_v33  ;;  %v2623_v63 = vpop.f32.mrb[31].mxu0  ;;  %v1635_v1 = vsel %vm440_vm4, %v1629_v59, -inf }
0x182c   :  { %1636 = vmax.xlane.f32.xlu0 %v1635_v1 }
0x182d   :  { %v1638_v4 = vsel %vm440_vm4, %v1632_v62, -inf }
0x1830   :  { %1639 = vmax.xlane.f32.xlu0 %v1638_v4  ;;  %v1749_v5 = vpop.f32.mrb[32].mxu0 }
0x1831   :  { %v1750_v7 = vadd.f32 %v1749_v5, %v3148_v31  ;;  %v2634_v8 = vpop.f32.mrb[33].mxu0 }
0x1832   :  { %v1752_v0 = vpop.f32.mrb[34].mxu0 }
0x1833   :  { %v1753_v3 = vadd.f32 %v1752_v0, %v3153_v33  ;;  %v2635_v9 = vpop.f32.mrb[35].mxu0  ;;  %v1756_v10 = vsel %vm440_vm4, %v1750_v7, -inf }
0x1834   :  { %1757 = vmax.xlane.f32.xlu0 %v1756_v10  ;;  %v2765_v10 = vld [vmem:[%s3597_s10 + $0x10] sm:$0xff]  }
0x1835   :  { %v1759_v11 = vsel %vm440_vm4, %v1753_v3, -inf  ;;  %2643 = vmatpush3.bf16.msra.mxu0 %v2765_v10  ;;  %v2379_v10 = vld [vmem:[%s3599_s12 + $0x1] ss:$0 sm:$0xff] }
0x1836   :  { %1760 = vmax.xlane.f32.xlu1 %v1759_v11  ;;  %2644 = vmatprep.subr.bf16.mxu0 %v2906_v2 }
0x18b1   :  { %v1516_v12 = vpop.xlane.xlu0 %1515 }
0x18b2   :  { %v1520_v13 = vsub.f32 %v1508_v49, %v1516_v12 }
0x18b3   :  { %v1519_v14 = vpop.xlane.xlu1 %1518 }
0x18b4   :  { %v1522_v15 = vmul.f32 1.442695, %v1520_v13  ;;  %v1521_v17 = vsub.f32 %v1511_v54, %v1519_v14 }
0x18b6   :  { %2843 = vpow2.f32 %v1522_v15  ;;  %v1524_v19 = vmul.f32 1.442695, %v1521_v17 }
0x18b8   :  { %2845 = vpow2.f32 %v1524_v19 }
0x18b9   :  { %v1637_v31 = vpop.xlane.xlu0 %1636 }
0x18ba   :  { %v1641_v51 = vsub.f32 %v1629_v59, %v1637_v31  ;;  %v2766_v31 = vld [vmem:[%s3597_s10 + $0x18] sm:$0xff]  }
0x18bb   :  { %2645 = vmatpush3.bf16.msra.mxu0 %v2766_v31 }
0x18bc   :  { %v1643_v20 = vmul.f32 1.442695, %v1641_v51  ;;  %2658 = vmatprep.subr.bf16.mxu0 %v2906_v2 }
0x18bd   :  { %v1640_v21 = vpop.xlane.xlu0 %1639 }
0x18be   :  { %2847 = vpow2.f32 %v1643_v20  ;;  %v1642_v33 = vsub.f32 %v1632_v62, %v1640_v21 }
0x18c0   :  { %v2844_v22 = vpop.eup %2843  ;;  %v1645_v53 = vmul.f32 1.442695, %v1642_v33 }
0x18c1   :  { %v1758_v23 = vpop.xlane.xlu0 %1757  ;;  %v1526_v24 = vsel %vm440_vm4, %v2844_v22, 0.0 }
0x18c2   :  { %v2846_v26 = vpop.eup %2845  ;;  %2849 = vpow2.f32 %v1645_v53  ;;  %v1762_v29 = vsub.f32 %v1750_v7, %v1758_v23  ;;  %1527 = vadd.xlane.f32.xlu0 %v1526_v24 }
0x18c3   :  { %v1529_v16 = vsel %vm440_vm4, %v2846_v26, 0.0  ;;  %v1761_v41 = vpop.xlane.xlu1 %1760 }
0x18c4   :  { %v1764_v30 = vmul.f32 1.442695, %v1762_v29  ;;  %1530 = vadd.xlane.f32.xlu1 %v1529_v16  ;;  %v1763_v42 = vsub.f32 %v1753_v3, %v1761_v41 }
0x18c6   :  { %2851 = vpow2.f32 %v1764_v30  ;;  %v1766_v43 = vmul.f32 1.442695, %v1763_v42 }
0x18c8   :  { %v2848_v32 = vpop.eup %2847  ;;  %2853 = vpow2.f32 %v1766_v43 }
0x18c9   :  { %v1647_v34 = vsel %vm440_vm4, %v2848_v32, 0.0 }
0x18ca   :  { %1648 = vadd.xlane.f32.xlu0 %v1647_v34 }
0x18cc   :  { %v2850_v18 = vpop.eup %2849 }
0x18cd   :  { %v1650_v35 = vsel %vm440_vm4, %v2850_v18, 0.0 }
0x18ce   :  { %1651 = vadd.xlane.f32.xlu1 %v1650_v35 }
0x18d0   :  { %v2852_v36 = vpop.eup %2851 }
0x18d1   :  { %v1768_v38 = vsel %vm440_vm4, %v2852_v36, 0.0 }
0x18d2   :  { %1769 = vadd.xlane.f32.xlu0 %v1768_v38  ;;  %v2854_v44 = vpop.eup %2853 }
0x18d3   :  { %v1771_v45 = vsel %vm440_vm4, %v2854_v44, 0.0 }
0x18df   :  { %1658 = vrot.lane.b32.xlu1 %v3373_v6, %s3631_s6 }
0x18e8   :  { %1537 = vrot.lane.b32.xlu0 %v3373_v6, %s3632_s7 }
0x1903   :  { %1772 = vadd.xlane.f32.xlu1 %v1771_v45 }
0x1914   :  { %1779 = vrot.lane.b32.xlu1 %v3373_v6, %s3633_s9 }
0x194f   :  { %v1528_v37 = vpop.xlane.xlu0 %1527 }
0x1951   :  { %v1531_v46 = vpop.xlane.xlu1 %1530 }
0x1952   :  { %2855 = vrcp.f32 %v1531_v46 }
0x1953   :  { %2857 = vrcp.f32 %v1528_v37 }
0x1957   :  { %v1649_v28 = vpop.xlane.xlu0 %1648 }
0x195b   :  { %v1652_v47 = vpop.xlane.xlu1 %1651 }
0x195c   :  { %2859 = vrcp.f32 %v1652_v47  ;;  %v2856_v48 = vpop.eup %2855 }
0x195d   :  { %2861 = vrcp.f32 %v1649_v28  ;;  %v2858_v50 = vpop.eup %2857  ;;  %v1535_v52 = vmul.f32 %v2856_v48, %v2846_v26 }
0x195e   :  { %v1534_v54 = vmul.f32 %v2858_v50, %v2844_v22 }
0x195f   :  { %v1770_v49 = vpop.xlane.xlu0 %1769  ;;  %v1659_v6 = vpop.permute.xlu1 %1658 }
0x1960   :  { %v1536_v56 = vpack.c.bf16 %v1535_v52, %v1534_v54  ;;  %2863 = vrcp.f32 %v1770_v49 }
0x1963   :  { %v1538_v55 = vpop.permute.xlu0 %1537 }
0x1964   :  { %2613 = vmatpush3.bf16.msra.mxu1 %v1538_v55 }
0x1965   :  { %2624 = vmatprep.subr.bf16.mxu1 %v2906_v2 }
0x1966   :  { %v2860_v57 = vpop.eup %2859 }
0x1967   :  { %2615 = vmatmul.mubr.msk.bf16.vlgmr.msra.gmra.mrb[40].mxu1 %vm440_vm4, %v1536_v56  ;;  %v2862_v58 = vpop.eup %2861  ;;  %v1656_v59 = vmul.f32 %v2860_v57, %v2850_v18 }
0x1968   :  { %2625 = vmatpush3.bf16.msra.mxu1 %v1659_v6  ;;  %2626 = vmatprep.mubr.msk.bf16.mxu1 %vm2907_vm2, %v2906_v2  ;;  %v1655_v60 = vmul.f32 %v2862_v58, %v2848_v32 }
0x1969   :  { %2636 = vmatprep.subr.bf16.mxu1 %v2906_v2 }
0x196a   :  { %v1657_v61 = vpack.c.bf16 %v1656_v59, %v1655_v60  ;;  %v2864_v1 = vpop.eup %2863 }
0x196b   :  { %v1776_v5 = vmul.f32 %v2864_v1, %v2852_v36 }
0x196f   :  { %2627 = vmatmul.mubr.msk.bf16.vlgmr.msra.gmra.mrb[44].mxu1 %vm440_vm4, %v1657_v61 }
0x1970   :  { %2638 = vmatprep.mubr.msk.bf16.mxu1 %vm2907_vm2, %v2906_v2 }
0x1990   :  { %v1773_v62 = vpop.xlane.xlu1 %1772 }
0x1991   :  { %2865 = vrcp.f32 %v1773_v62  ;;  %v2767_v62 = vld [vmem:[%s3601_s14 + $0x10] sm:$0xff]  }
0x1994   :  { %v1780_v63 = vpop.permute.xlu1 %1779 }
0x1995   :  { %2637 = vmatpush3.bf16.msra.mxu1 %v1780_v63  ;;  %v2768_v63 = vld [vmem:[%s3601_s14 + $0x18] sm:$0xff]  }
0x1996   :  { %2650 = vmatprep.subr.bf16.mxu1 %v2906_v2 }
0x199b   :  { %v2866_v4 = vpop.eup %2865 }
0x199c   :  { %v1777_v7 = vmul.f32 %v2866_v4, %v2854_v44 }
0x199e   :  { %v1778_v8 = vpack.c.bf16 %v1777_v7, %v1776_v5 }
0x19a0   :  { %2639 = vmatmul.mubr.msk.bf16.vlgmr.msra.gmra.mrb[48].mxu1 %vm440_vm4, %v1778_v8 }
0x19a1   :  { %2654 = vmatprep.mubr.msk.bf16.mxu1 %vm2907_vm2, %v2906_v2  ;;  %2651 = vmatpush3.bf16.msra.mxu1 %v2767_v62 }
0x19a2   :  { %2652 = vmatprep.subr.bf16.mxu1 %v2906_v2 }
0x19a5   :  { %2653 = vmatpush3.bf16.msra.mxu1 %v2768_v63 }
0x19a6   :  { %2678 = vmatprep.subr.bf16.mxu1 %v2906_v2 }
0x1a3a   :  { %v1577_v0 = vpop.f32.mrb[40].mxu1 }
0x1a3b   :  { %v2616_v3 = vpop.f32.mrb[41].mxu1 }
0x1a3c   :  { %v1580_v9 = vpop.f32.mrb[42].mxu1 }
0x1a3d   :  { %v2719_v11 = vpack.i.bf16 %v1580_v9, %v1577_v0  ;;  %v2617_v12 = vpop.f32.mrb[43].mxu1 }
0x1a3f   :  { %2720 = vrot.lane.b32.xlu1 %v2719_v11, %s3634_s30 }
0x1a42   :  { %v1698_v13 = vpop.f32.mrb[44].mxu1 }
0x1a43   :  { %v2628_v14 = vpop.f32.mrb[45].mxu1 }
0x1a44   :  { %v1701_v15 = vpop.f32.mrb[46].mxu1  ;;  %v2380_v14 = vld [vmem:[%s3600_s13 + $0x1] ss:$0 sm:$0xff] }
0x1a45   :  { %v2724_v17 = vpack.i.bf16 %v1701_v15, %v1698_v13  ;;  %v2629_v19 = vpop.f32.mrb[47].mxu1 }
0x1a47   :  { %2725 = vrot.lane.b32.xlu0 %v2724_v17, %s3635_s25 }
0x1a73   :  { %v1819_v51 = vpop.f32.mrb[48].mxu1 }
0x1a74   :  { %v2640_v20 = vpop.f32.mrb[49].mxu1 }
0x1a75   :  { %v1822_v21 = vpop.f32.mrb[50].mxu1  ;;  %v2770_v20 = vld [vmem:[%s3603_s16 + $0x48] sm:$0xff]  }
0x1a76   :  { %v2729_v33 = vpack.i.bf16 %v1822_v21, %v1819_v51  ;;  %v2641_v22 = vpop.f32.mrb[51].mxu1  ;;  %v2769_v51 = vld [vmem:[%s3603_s16 + $0x40] sm:$0xff]   ;;  %v2771_v21 = vld [vmem:[%s3603_s16 + $0x50] sm:$0xff]  }
0x1a77   :  { %v2773_v22 = vld [vmem:[%s3603_s16 + $0x60] sm:$0xff]  }
0x1a78   :  { %2730 = vrot.lane.b32.xlu1 %v2729_v33, %s3636_s0  ;;  %v2772_v33 = vld [vmem:[%s3603_s16 + $0x58] sm:$0xff]  }
0x1ab1   :  { %v2721_v53 = vpop.permute.xlu1 %2720 }
0x1ab2   :  { %v2723_v24 = vunpack.i.h.bf16 %v2721_v53  ;;  %v2722_v26 = vunpack.i.l.bf16 %v2721_v53  ;;  %v2774_v53 = vld [vmem:[%s3603_s16 + $0x68] sm:$0xff]  }
0x1ab4   :  { %v1851_v32 = vsel %vm392_vm3, %v3424_v40, %v2723_v24  ;;  %v1850_v34 = vsel %vm392_vm3, %v3422_v39, %v2722_v26  ;;  %v2373_v39 = vld [vmem:[%s3598_s11 + $0x1] ss:$0 sm:$0xff]  ;;  %v2776_v24 = vld [vmem:[%s3603_s16 + $0x78] sm:$0xff]  }
0x1ab5   :  { %v2386_v26 = vld [vmem:[%s3602_s15 + $0x1] ss:$0 sm:$0xff] }
0x1ab9   :  { %v2726_v23 = vpop.permute.xlu0 %2725 }
0x1aba   :  { %v2728_v29 = vunpack.i.h.bf16 %v2726_v23  ;;  %v2727_v16 = vunpack.i.l.bf16 %v2726_v23  ;;  %v2775_v23 = vld [vmem:[%s3603_s16 + $0x70] sm:$0xff]  }
0x1abc   :  { %v1853_v36 = vsel %vm440_vm4, %v1851_v32, %v2728_v29  ;;  %v1852_v38 = vsel %vm440_vm4, %v1850_v34, %v2727_v16 }
0x1aea   :  { %v2731_v30 = vpop.permute.xlu1 %2730 }
0x1aeb   :  { %v2733_v18 = vunpack.i.h.bf16 %v2731_v30  ;;  %v2732_v35 = vunpack.i.l.bf16 %v2731_v30 }
0x1aed   :  { %v1855_v41 = vsel %vm902_vm5, %v1853_v36, %v2733_v18  ;;  %v1854_v42 = vsel %vm902_vm5, %v1852_v38, %v2732_v35 }
0x1aee   :  { %v1856_v43 = vpack.c.bf16 %v1855_v41, %v1854_v42 }
0x1af0   :  { %2647 = vmatmul.mubr.msk.bf16.vlgmr.msra.gmra.mrb[36].mxu0 %vm226_vm1, %v1856_v43 }
0x1af1   :  { %2674 = vmatprep.mubr.msk.bf16.mxu0 %vm2907_vm2, %v2906_v2  ;;  %2659 = vmatpush3.bf16.msra.mxu0 %v2769_v51 }
0x1af2   :  { %2660 = vmatprep.subr.bf16.mxu0 %v2906_v2 }
0x1af5   :  { %2661 = vmatpush3.bf16.msra.mxu0 %v2770_v20 }
0x1af6   :  { %2662 = vmatprep.subr.bf16.mxu0 %v2906_v2 }
0x1af9   :  { %2663 = vmatpush3.bf16.msra.mxu0 %v2771_v21 }
0x1afa   :  { %2664 = vmatprep.subr.bf16.mxu0 %v2906_v2 }
0x1afd   :  { %2665 = vmatpush3.bf16.msra.mxu0 %v2772_v33 }
0x1afe   :  { %2666 = vmatprep.subr.bf16.mxu0 %v2906_v2 }
0x1b01   :  { %2667 = vmatpush3.bf16.msra.mxu0 %v2773_v22 }
0x1b02   :  { %2668 = vmatprep.subr.bf16.mxu0 %v2906_v2 }
0x1b05   :  { %2669 = vmatpush3.bf16.msra.mxu0 %v2774_v53 }
0x1b06   :  { %2670 = vmatprep.subr.bf16.mxu0 %v2906_v2 }
0x1b09   :  { %2671 = vmatpush3.bf16.msra.mxu0 %v2775_v23 }
0x1b0a   :  { %2672 = vmatprep.subr.bf16.mxu0 %v2906_v2 }
0x1b0d   :  { %2673 = vmatpush3.bf16.msra.mxu0 %v2776_v24 }
0x1bc3   :  { %v1919_v40 = vpop.f32.mrb[36].mxu0 }
0x1bc4   :  { %v1920_v44 = vadd.f32 %v2373_v39, %v1919_v40  ;;  %v2648_v45 = vpop.f32.mrb[37].mxu0 }
0x1bc5   :  { %v1922_v46 = vpop.f32.mrb[38].mxu0 }
0x1bc6   :  { %v1926_v37 = vadd.f32 %v1920_v44, %v3341_v25  ;;  %v1923_v28 = vadd.f32 %v2373_v39, %v1922_v46  ;;  %v2649_v47 = vpop.f32.mrb[39].mxu0 }
0x1bc7   :  { %v2409_v47 = vld [vmem:[%s3604_s17 + $0x1] ss:$0 sm:$0xff] }
0x1bc8   :  { %1928 = vst.msk [vmem:[#allocation2] sm:$0xff] %vm226_vm1, %v1926_v37  ;;  %v1927_v48 = vadd.f32 %v1923_v28, %v3345_v27 }
0x1bca   :  { %1929 = vst.msk [vmem:[#allocation2 + $0x8] sm:$0xff] %vm226_vm1, %v1927_v48 }
0x1bcf   :  { %v3491_v49 = vld [vmem:[#allocation2] sm:$0xff] }
0x1bd0   :  { %v1936_v50 = vsel %vm226_vm1, %v3491_v49, 0.0 }
0x1bd1   :  { %1937 = vadd.xlane.f32.xlu0 %v1936_v50  ;;  %v3495_v52 = vld [vmem:[#allocation2 + $0x8] sm:$0xff] }
0x1bd2   :  { %v1939_v54 = vsel %vm226_vm1, %v3495_v52, 0.0 }
0x1bd3   :  { %1940 = vadd.xlane.f32.xlu1 %v1939_v54 }
0x1c5e   :  { %v1938_v25 = vpop.xlane.xlu0 %1937 }
0x1c5f   :  { %v1942_v55 = vmul.f32 0.03125, %v1938_v25 }
0x1c60   :  { %v1941_v56 = vpop.xlane.xlu1 %1940 }
0x1c61   :  { %v1944_v57 = vsub.f32 %v3491_v49, %v1942_v55  ;;  %v1943_v27 = vmul.f32 0.03125, %v1941_v56 }
0x1c63   :  { %v1945_v6 = vsub.f32 %v3495_v52, %v1943_v27  ;;  %v1946_v58 = vmul.f32 %v1944_v57, %v1944_v57 }
0x1c65   :  { %v1948_v59 = vsel %vm226_vm1, %v1946_v58, 0.0  ;;  %v1947_v60 = vmul.f32 %v1945_v6, %v1945_v6 }
0x1c66   :  { %1949 = vadd.xlane.f32.xlu0 %v1948_v59 }
0x1c67   :  { %v1951_v61 = vsel %vm226_vm1, %v1947_v60, 0.0 }
0x1c6a   :  { %1952 = vadd.xlane.f32.xlu0 %v1951_v61 }
0x1cf3   :  { %v1950_v1 = vpop.xlane.xlu0 %1949 }
0x1cf4   :  { %v1954_v4 = vmul.f32 0.03125, %v1950_v1 }
0x1cf6   :  { %v1956_v5 = vadd.f32 1e-05, %v1954_v4 }
0x1cf7   :  { %v1953_v7 = vpop.xlane.xlu0 %1952 }
0x1cf8   :  { %2867 = vrsqrt.f32 %v1956_v5  ;;  %v1955_v8 = vmul.f32 0.03125, %v1953_v7  ;;  %v2778_v5 = vld [vmem:[%s3607_s20 + $0x8] sm:$0xff]  }
0x1cfa   :  { %v1957_v0 = vadd.f32 1e-05, %v1955_v8 }
0x1cfc   :  { %2869 = vrsqrt.f32 %v1957_v0 }
0x1d02   :  { %v2868_v3 = vpop.eup %2867 }
0x1d03   :  { %v1960_v9 = vmul.f32 %v2868_v3, %v1944_v57 }
0x1d05   :  { %v1968_v12 = vmul.f32 %v2379_v10, %v1960_v9  ;;  %v2418_v9 = vld [vmem:[%s3605_s18] ss:$0 sm:$0xff] }
0x1d06   :  { %v2870_v11 = vpop.eup %2869 }
0x1d07   :  { %v1961_v13 = vmul.f32 %v2870_v11, %v1945_v6  ;;  %v1976_v17 = vadd.f32 %v2380_v14, %v1968_v12  ;;  %v2419_v11 = vld [vmem:[%s3606_s19] ss:$0 sm:$0xff] }
0x1d09   :  { %v1969_v15 = vmul.f32 %v2379_v10, %v1961_v13 }
0x1d0b   :  { %v1977_v19 = vadd.f32 %v2380_v14, %v1969_v15 }
0x1d0d   :  { %v1978_v31 = vpack.c.bf16 %v1977_v19, %v1976_v17 }
0x1d0f   :  { %2655 = vmatmul.mubr.msk.bf16.vlgmr.msra.gmra.mrb[52].mxu1 %vm226_vm1, %v1978_v31 }
0x1d10   :  { %2682 = vmatprep.mubr.msk.bf16.mxu1 %vm2907_vm2, %v2906_v2 }
0x1de2   :  { %v2041_v29 = vpop.f32.mrb[52].mxu1 }
0x1de3   :  { %v2042_v16 = vadd.f32 %v2386_v26, %v2041_v29  ;;  %v2656_v30 = vpop.f32.mrb[53].mxu1 }
0x1de4   :  { %v2044_v32 = vpop.f32.mrb[54].mxu1 }
0x1de5   :  { %v2390_v34 = vmul.f32 -1.702, %v2042_v16  ;;  %v2045_v18 = vadd.f32 %v2386_v26, %v2044_v32  ;;  %v2657_v35 = vpop.f32.mrb[55].mxu1 }
0x1de7   :  { %v2052_v36 = vmul.f32 1.442695, %v2390_v34  ;;  %v2391_v38 = vmul.f32 -1.702, %v2045_v18 }
0x1de9   :  { %2871 = vpow2.f32 %v2052_v36  ;;  %v2054_v41 = vmul.f32 1.442695, %v2391_v38 }
0x1deb   :  { %2873 = vpow2.f32 %v2054_v41 }
0x1df3   :  { %v2872_v42 = vpop.eup %2871 }
0x1df4   :  { %v2056_v43 = vadd.f32 1.0, %v2872_v42 }
0x1df5   :  { %v2874_v39 = vpop.eup %2873 }
0x1df6   :  { %2875 = vrcp.f32 %v2056_v43  ;;  %v2057_v40 = vadd.f32 1.0, %v2874_v39 }
0x1df8   :  { %2877 = vrcp.f32 %v2057_v40 }
0x1e00   :  { %v2876_v44 = vpop.eup %2875 }
0x1e01   :  { %v2062_v46 = vmul.f32 %v2876_v44, %v2042_v16 }
0x1e02   :  { %v2878_v45 = vpop.eup %2877 }
0x1e03   :  { %v2063_v37 = vmul.f32 %v2878_v45, %v2045_v18 }
0x1e05   :  { %v2064_v28 = vpack.c.bf16 %v2063_v37, %v2062_v46 }
0x1e07   :  { %2675 = vmatmul.mubr.bf16.vlgmr.msra.gmra.mrb[40].mxu0 %v2064_v28 }
0x1eda   :  { %v2172_v48 = vpop.f32.mrb[40].mxu0 }
0x1edb   :  { %v2173_v50 = vadd.f32 %v2409_v47, %v2172_v48  ;;  %v2676_v54 = vpop.f32.mrb[41].mxu0 }
0x1edc   :  { %v2175_v25 = vpop.f32.mrb[42].mxu0 }
0x1edd   :  { %v2179_v55 = vadd.f32 %v2173_v50, %v3491_v49  ;;  %v2176_v56 = vadd.f32 %v2409_v47, %v2175_v25  ;;  %v2677_v57 = vpop.f32.mrb[43].mxu0 }
0x1edf   :  { %2181 = vst.msk [vmem:[#allocation2] sm:$0xff] %vm226_vm1, %v2179_v55  ;;  %v2180_v27 = vadd.f32 %v2176_v56, %v3495_v52  ;;  %v2777_v52 = vld [vmem:[%s3607_s20] sm:$0xff]   ;;  %s2922_s20 = smov [#allocation3]  }
0x1ee0   :  { %2679 = vmatpush3.bf16.msra.mxu1 %v2777_v52  ;;  %s2287_s28 = sshll.u32 %s2922_s20, 4  ;;  %s2288_s28 = int_to_ptr.vmem [resolvable:$true] %s2287_s28 }
0x1ee1   :  { %2182 = vst.msk [vmem:[#allocation2 + $0x8] sm:$0xff] %vm226_vm1, %v2180_v27  ;;  %2680 = vmatprep.subr.bf16.mxu1 %v2906_v2  ;;  %s2881_s12 = scalar_lea.vmem %s2288_s28, 32  ;;  %p2886_p1 = scmp.lt.s32.totalorder %s2288_s28, %s2288_s28 }
0x1ee2   :  { %p2882_p0 = scmp.ne.s32.totalorder %s2288_s28, %s2881_s12  ;;  %p2887_p2 = scmp.lt.s32.totalorder %s2881_s12, %s2881_s12 }
0x1ee4   :  { %2681 = vmatpush3.bf16.msra.mxu1 %v2778_v5  ;;  %p2888_p3 = por %p2887_p2, %p2886_p1 }
0x1ee6   :  { %v2183_v59 = vld [vmem:[#allocation2] sm:$0x1]  ;;  %p2889_p4 = pnand %p2888_p3, %p2882_p0 }
0x1ee8   :  { %v2184_v6 = vld [vmem:[#allocation2 + $0x8] sm:$0x1] }
0x1ee9   :  { %v2186_v58 = vrot.slane %v2184_v6, 7 }
0x1eeb   :  { %v2189_v60 = vsel %vm2188_vm6, %v2183_v59, %v2186_v58 }
0x1eec   :  { %v2193_v61 = vsel %vm2192_vm7, %v2189_v60, 0.0 }
0x1eed   :  { %2194 = vadd.xlane.f32.xlu0 %v2193_v61 }
0x1f7a   :  { %v2195_v62 = vpop.xlane.xlu0 %2194 }
0x1f7b   :  { %v2196_v63 = vmul.f32 0.03125, %v2195_v62 }
0x1f7d   :  { %v2197_v1 = vsub.f32 %v2189_v60, %v2196_v63 }
0x1f7f   :  { %v2198_v49 = vmul.f32 %v2197_v1, %v2197_v1 }
0x1f81   :  { %v2199_v4 = vsel %vm2192_vm7, %v2198_v49, 0.0 }
0x1f82   :  { %2200 = vadd.xlane.f32.xlu1 %v2199_v4 }
0x200f   :  { %v2201_v7 = vpop.xlane.xlu1 %2200 }
0x2010   :  { %v2202_v8 = vmul.f32 0.03125, %v2201_v7 }
0x2012   :  { %v2203_v0 = vadd.f32 1e-05, %v2202_v8 }
0x2014   :  { %2879 = vrsqrt.f32 %v2203_v0 }
0x201e   :  { %v2880_v3 = vpop.eup %2879 }
0x201f   :  { %v2205_v10 = vmul.f32 %v2880_v3, %v2197_v1 }
0x2021   :  { %v2212_v12 = vmul.f32 %v2418_v9, %v2205_v10 }
0x2023   :  { %v2219_v13 = vadd.f32 %v2419_v11, %v2212_v12 }
0x2025   :  { %v2220_v14 = vpack.c.bf16 %v2219_v13, %v2219_v13 }
0x2027   :  { %2683 = vmatmul.mubr.msk.bf16.vlgmr.msra.gmra.mrb[56].mxu1 %vm226_vm1, %v2220_v14 }
0x20fa   :  { %v2274_v2 = vpop.f32.mrb[56].mxu1 }
0x20fb   :  { %2280 = vst [vmem:[#allocation3] sm:$0x3] %v2274_v2  ;;  %v2684_v15 = vpop.f32.mrb[57].mxu1 }
0x20fc   :  { %v2277_v17 = vpop.f32.mrb[58].mxu1 }
0x20fd   :  { %2892 = shalt.err (!%p2889_p4)
}
0x20fe   :  { %s2893_s6 = scalar_lea.hbm %s3608_s21, 32 }
0x20ff   :  { %p2894_p5 = scmp.ne.s32.totalorder %s3608_s21, %s2893_s6  ;;  %p2897_p6 = scmp.lt.u32.totalorder %s2893_s6, %s3608_s21 }
0x2101   :  { %p2899_p7 = pnand %p2897_p6, %p2894_p5 }
0x2103   :  { %2902 = shalt.err (!%p2899_p7)
}
0x2104   :  { %2290 = dma.vmem_to_hbm [thread:$0]  %s2288_s28, 32, %s3608_s21, [#allocation4]   ;;  %v2685_v19 = vpop.f32.mrb[59].mxu1 }
0x2105   :  { %2903 = dma.done.wait [#allocation4], 32  }
0x2106   :  { %2904 = vsyncadd [#allocation4], 4294967264 }
0x2107   :  { %2294 = vsyncpa [#allocation4], 1 }

</bundles_post_ra>
